<compile_context>
chip_gen: v7x
topology: tpu7x:2x2x1
jax: 0.10.0
libtpu: 0.0.40
codegen_flags: <defaults>
</compile_context>

<pallas_src>
import functools
import math

import jax
import jax.numpy as jnp
import numpy as np
from jax.experimental import pallas as pl
from jax.experimental.pallas import tpu as pltpu

_LANE = 128


def _round_up(x, m):
    return (x + m - 1) // m * m


def _vmem_limit_bytes():
    """Generation-aware VMEM budget (v5e/v6e 128 MiB, v7x 64 MiB/TC) with headroom."""
    try:
        cap = int(pltpu.get_tpu_info().vmem_capacity_bytes)
    except Exception:  # pragma: no cover - conservative fallback
        cap = 64 << 20
    return max(32 << 20, min(int(cap * 0.8), 100 << 20))


# --------------------------------------------------------------------------
# Kernel
# --------------------------------------------------------------------------
def _conv_stacked(src_ref, n_blocks, h0, band_ref, bias_ref):
    """3x3 conv over ALL row-parity blocks of one stage as 3 stacked banded matmuls.

    src_ref rows: [ghost_top(h0) | parity 0..P-1 (h0 rows each) | ghost_bot(h0)].
    The +-1 fine-row shifts at the parity wrap are pre-baked into the ghost blocks,
    so for every tap dh the LHS is one contiguous row slice shifted by dh*h0, the RHS
    band is streamed into the MXU exactly once per tap, and M = P*h0.
    """
    stacked = n_blocks * h0
    acc = None
    for dh in range(3):
        lhs = src_ref[dh * h0:dh * h0 + stacked, :]
        part = jnp.dot(lhs, band_ref[dh], preferred_element_type=jnp.float32)
        acc = part if acc is None else acc + part
    return acc + bias_ref[...]


def _make_fused_kernel(n_stages, h0):
    def kernel(*refs):
        # ---- unpack refs: x, (band, bias)*n_stages, band_last, bias_last, out, scratch
        x_ref = refs[0]
        bands, biases = [], []
        idx = 1
        for _ in range(n_stages):
            bands.append(refs[idx])
            biases.append(refs[idx + 1])
            idx += 2
        band_last, bias_last = refs[idx], refs[idx + 1]
        idx += 2
        o_ref = refs[idx]
        idx += 1
        planes = refs[idx:]                       # n_stages + 1 stage scratches

        f32 = jnp.float32

        # ---- stage-0 activation: x plus its two (+-1 row-shifted) ghost blocks ----
        x = x_ref[0].astype(f32)                  # (h0, K0_pad)
        z0 = jnp.zeros((1, x.shape[1]), f32)
        s0 = planes[0]
        s0[0:1, :] = z0                           # top image padding row
        s0[1:h0, :] = x[:h0 - 1, :]               # ghost top = x shifted down by 1
        s0[h0:2 * h0, :] = x                      # parity 0
        s0[2 * h0:3 * h0 - 1, :] = x[1:, :]       # ghost bottom = x shifted up by 1
        s0[3 * h0 - 1:3 * h0, :] = z0             # bottom image padding row

        # ---- conv3x3 -> pixel-shuffle-x2 stages, fully resident in VMEM ----
        for s in range(n_stages):
            p_in = 1 << s
            cur, nxt = planes[s], planes[s + 1]
            ncols = bands[s].shape[-1] // 2       # columns per sub-pixel row parity
            out = _conv_stacked(cur, p_in, h0, bands[s], biases[s])  # (p_in*h0, 2*ncols)

            # interior parity blocks of the next stage: parity 2q / 2q+1
            for q in range(p_in):
                blk = out[q * h0:(q + 1) * h0, :]
                nxt[(1 + 2 * q) * h0:(2 + 2 * q) * h0, :] = blk[:, :ncols]
                nxt[(2 + 2 * q) * h0:(3 + 2 * q) * h0, :] = blk[:, ncols:]

            # circular ghost blocks of the next stage (carry the +-1 fine-row shift)
            zr = jnp.zeros((1, ncols), f32)
            top_src = out[(p_in - 1) * h0:p_in * h0, ncols:]   # parity 2*p_in - 1
            bot_src = out[0:h0, :ncols]                        # parity 0
            p_out = 2 * p_in
            nxt[0:1, :] = zr
            nxt[1:h0, :] = top_src[:h0 - 1, :]
            gb = (p_out + 1) * h0
            nxt[gb:gb + h0 - 1, :] = bot_src[1:, :]
            nxt[gb + h0 - 1:gb + h0, :] = zr

        # ---- final 3x3 conv: one stacked result, one lane-dense aligned store ----
        p_in = 1 << n_stages
        out = _conv_stacked(planes[n_stages], p_in, h0, band_last, bias_last)
        o_ref[0, :, :] = out.astype(o_ref.dtype)

    return kernel


# --------------------------------------------------------------------------
# Host-side construction of the banded weights (folds 3x3 column taps, the
# pixel-shuffle column interleave AND the sub-pixel row parity into matmul N).
# --------------------------------------------------------------------------
def _build_stage_band(w, b, win, k_pad=None):
    """conv3x3(Cin -> 4C) fused with PixelShuffle(2), row parities folded into N.

    Returns band (3, k_pad, 2*ncols) and bias (1, 2*ncols) where ncols = 2*win*C.
    Column i*ncols + (2*wc + j)*C + c is sub-pixel row parity i, fine column 2*wc+j,
    channel c.
    """
    w = np.asarray(w, np.float32)      # (3, 3, Cin, 4*C)
    b = np.asarray(b, np.float32)
    cin = w.shape[2]
    c_out = w.shape[3] // 4
    k = win * cin
    k_pad = k if k_pad is None else k_pad
    ncols = 2 * win * c_out
    band = np.zeros((3, k_pad, 2 * ncols), np.float32)
    bias = np.zeros((1, 2 * ncols), np.float32)
    for i in range(2):                      # sub-pixel ROW parity -> N-block
        for wc in range(win):
            for j in range(2):              # sub-pixel column parity
                for c in range(c_out):
                    n = i * ncols + (2 * wc + j) * c_out + c
                    co = c * 4 + 2 * i + j  # PyTorch PixelShuffle channel order
                    bias[0, n] = b[co]
                    for dh in range(3):
                        for dw in range(3):
                            col = wc + dw - 1
                            if 0 <= col < win:   # out-of-range taps hit zero padding
                                band[dh, col * cin:(col + 1) * cin, n] = w[dh, dw, :, co]
    return jnp.asarray(band), jnp.asarray(bias)


def _build_last_band(w, b, win, n_pad, k_pad=None):
    """Plain conv3x3(C -> out_nc) as banded weights, output columns zero-padded."""
    w = np.asarray(w, np.float32)      # (3, 3, Cin, out_nc)
    b = np.asarray(b, np.float32)
    cin, cout = w.shape[2], w.shape[3]
    k = win * cin
    k_pad = k if k_pad is None else k_pad
    band = np.zeros((3, k_pad, n_pad), np.float32)
    bias = np.zeros((1, n_pad), np.float32)
    for wc in range(win):
        for co in range(cout):
            n = wc * cout + co
            bias[0, n] = b[co]
            for dh in range(3):
                for dw in range(3):
                    col = wc + dw - 1
                    if 0 <= col < win:
                        band[dh, col * cin:(col + 1) * cin, n] = w[dh, dw, :, co]
    return jnp.asarray(band), jnp.asarray(bias)


def build_banded_params(params, w0):
    n_feat = params[0][0].shape[2]
    flat = []
    win = w0
    k0_pad = _round_up(win * n_feat, _LANE)      # lane-dense stage-0 K
    for si, (w, b) in enumerate(params[:-1]):
        band, bias = _build_stage_band(w, b, win, k_pad=k0_pad if si == 0 else None)
        flat += [band, bias]
        win *= 2
    w_last, b_last = params[-1]
    out_nc = w_last.shape[3]
    n_pad = _round_up(win * out_nc, _LANE)       # lane-dense final-conv output
    k_last_pad = k0_pad if len(params) == 1 else None
    band, bias = _build_last_band(w_last, b_last, win, n_pad, k_pad=k_last_pad)
    flat += [band, bias]
    return flat


# --------------------------------------------------------------------------
# Forward pass: NCHW in / NCHW out (matches torch module semantics).
# --------------------------------------------------------------------------
def _const_index_map(ndim, b):
    return (0,) * ndim


def prog_pixel_shuffle_forward(x_nchw, banded_inputs, *, n_feat, out_nc, scale):
    n, cin, h0, w0 = x_nchw.shape
    n_stages = int(math.log2(scale))
    hf, wf = h0 * scale, w0 * scale
    n_planes = 1 << n_stages

    k0 = w0 * cin
    k0_pad = banded_inputs[0].shape[1]           # padded stage-0 K
    n_pad = banded_inputs[-1].shape[-1]          # padded final-conv output columns

    # NCHW -> (N, H0, W0*Cin) lane-dense rows, zero-padded to the banded K width.
    x_rows = jnp.transpose(x_nchw, (0, 2, 3, 1)).reshape(n, h0, k0)
    if k0_pad > k0:
        x_rows = jnp.pad(x_rows, ((0, 0), (0, 0), (0, k0_pad - k0)))

    in_specs = [pl.BlockSpec((1, h0, k0_pad), lambda b: (b, 0, 0))]
    for arr in banded_inputs:
        in_specs.append(
            pl.BlockSpec(arr.shape, functools.partial(_const_index_map, arr.ndim)))

    # TODO(synk): stage the constant banded weights once (or lower their pipeline
    #             buffer count), add a row-tiled grid axis with halo + block-banded
    #             weights for production resolutions so v7x's 64 MiB VMEM is respected.
    out_rows = pl.pallas_call(
        _make_fused_kernel(n_stages, h0),
        out_shape=jax.ShapeDtypeStruct((n, n_planes * h0, n_pad), x_nchw.dtype),
        grid=(n,),
        in_specs=in_specs,
        out_specs=pl.BlockSpec((1, n_planes * h0, n_pad), lambda b: (b, 0, 0)),
        scratch_shapes=[
            pltpu.VMEM((((1 << s) + 2) * h0,
                        k0_pad if s == 0 else (w0 << s) * n_feat), jnp.float32)
            for s in range(n_stages + 1)
        ],
        compiler_params=pltpu.CompilerParams(
            dimension_semantics=("parallel",),
            vmem_limit_bytes=_vmem_limit_bytes(),
        ),
    )(x_rows, *banded_inputs)

    # Rows are (parity q, coarse row r) ordered; tiny fix-up + un-padding left to XLA.
    out = out_rows.reshape(n, n_planes, h0, n_pad)[:, :, :, :wf * out_nc]
    out = out.reshape(n, n_planes, h0, wf, out_nc)
    out = jnp.transpose(out, (0, 4, 2, 1, 3)).reshape(n, out_nc, hf, wf)
    return out


# --------------------------------------------------------------------------
# Parameter construction (deterministic, in-script).  Weight layout (3, 3, Cin, Cout).
# --------------------------------------------------------------------------
def make_params(key, n_feat, out_nc, scale):
    assert scale & (scale - 1) == 0
    n_stages = int(math.log(scale, 2))
    params = []
    fan_in = n_feat * 9
    bound = 1.0 / math.sqrt(fan_in)
    for _ in range(n_stages):
        key, kw, kb = jax.random.split(key, 3)
        w = jax.random.uniform(kw, (3, 3, n_feat, n_feat * 4), jnp.float32, -bound, bound)
        b = jax.random.uniform(kb, (n_feat * 4,), jnp.float32, -bound, bound)
        params.append((w, b))
    key, kw, kb = jax.random.split(key, 3)
    w_last = jax.random.uniform(kw, (3, 3, n_feat, out_nc), jnp.float32, -bound, bound)
    b_last = jax.random.uniform(kb, (out_nc,), jnp.float32, -bound, bound)
    params.append((w_last, b_last))
    return params


# --------------------------------------------------------------------------
# Pure-JAX reference (correctness check only).
# --------------------------------------------------------------------------
def pixel_shuffle_x2_nhwc(x_nhwc):
    n, h, w, c4 = x_nhwc.shape
    r = 2
    c = c4 // (r * r)
    x = x_nhwc.reshape(n, h, w, c, r, r)
    x = jnp.transpose(x, (0, 1, 4, 2, 5, 3))
    return x.reshape(n, h * r, w * r, c)


def reference_forward(x_nchw, params):
    def conv(x, w, b):
        y = jax.lax.conv_general_dilated(
            x, w, window_strides=(1, 1), padding="SAME",
            dimension_numbers=("NHWC", "HWIO", "NHWC"))
        return y + b[None, None, None, :]

    x = jnp.transpose(x_nchw, (0, 2, 3, 1))
    for w, b in params[:-1]:
        x = conv(x, w, b)
        x = pixel_shuffle_x2_nhwc(x)
    w, b = params[-1]
    x = conv(x, w, b)
    return jnp.transpose(x, (0, 3, 1, 2))


if __name__ == "__main__":
    n_feat, out_nc, scale = 4, 3, 4      # two conv+shuffle stages, then final conv
    N, H, W = 2, 16, 16

    key = jax.random.PRNGKey(0)
    key, kx = jax.random.split(key)
    x = jax.random.normal(kx, (N, n_feat, H, W), jnp.float32)      # NCHW, as in torch
    params = make_params(key, n_feat, out_nc, scale)
    banded = build_banded_params(params, W)

    fwd = jax.jit(functools.partial(prog_pixel_shuffle_forward,
                                    n_feat=n_feat, out_nc=out_nc, scale=scale))
    out = jax.block_until_ready(fwd(x, banded))

    expected_shape = (N, out_nc, H * scale, W * scale)
    assert out.shape == expected_shape, (out.shape, expected_shape)

    ref = jax.block_until_ready(reference_forward(x, params))
    np.testing.assert_allclose(np.asarray(out), np.asarray(ref), atol=1e-3, rtol=1e-3)

    print("KERNEL_OK")
</pallas_src>

<mosaic_0001>
module attributes {stable_mosaic.version = 11 : i64} {
  func.func @kernel(%arg0: i32, %arg1: memref<1x16x128xf32, #tpu.memory_space<vmem>>, %arg2: memref<3x128x256xf32, #tpu.memory_space<vmem>>, %arg3: memref<1x256xf32, #tpu.memory_space<vmem>>, %arg4: memref<3x128x512xf32, #tpu.memory_space<vmem>>, %arg5: memref<1x512xf32, #tpu.memory_space<vmem>>, %arg6: memref<3x256x256xf32, #tpu.memory_space<vmem>>, %arg7: memref<1x256xf32, #tpu.memory_space<vmem>>, %arg8: memref<1x64x256xf32, #tpu.memory_space<vmem>>, %arg9: memref<48x128xf32, #tpu.memory_space<vmem>>, %arg10: memref<64x128xf32, #tpu.memory_space<vmem>>, %arg11: memref<96x256xf32, #tpu.memory_space<vmem>>) attributes {dimension_semantics = [#tpu.dimension_semantics<parallel>], iteration_bounds = array<i64: 2>, scalar_prefetch = 0 : i64, scratch_operands = 3 : i64, tpu.core_type = #tpu.core_type<tc>, window_params = [{transform_indices = @transform_0, window_bounds = array<i64: 1, 16, 128>}, {pipeline_mode = #tpu.pipeline_mode<synchronous>, transform_indices = @transform_1, window_bounds = array<i64: 3, 128, 256>}, {pipeline_mode = #tpu.pipeline_mode<synchronous>, transform_indices = @transform_2, window_bounds = array<i64: 1, 256>}, {pipeline_mode = #tpu.pipeline_mode<synchronous>, transform_indices = @transform_3, window_bounds = array<i64: 3, 128, 512>}, {pipeline_mode = #tpu.pipeline_mode<synchronous>, transform_indices = @transform_4, window_bounds = array<i64: 1, 512>}, {pipeline_mode = #tpu.pipeline_mode<synchronous>, transform_indices = @transform_5, window_bounds = array<i64: 3, 256, 256>}, {pipeline_mode = #tpu.pipeline_mode<synchronous>, transform_indices = @transform_6, window_bounds = array<i64: 1, 256>}, {transform_indices = @transform_7, window_bounds = array<i64: 1, 64, 256>}]} {
    %c0 = arith.constant 0 : index
    %c0_0 = arith.constant 0 : index
    %c0_1 = arith.constant 0 : index
    %0 = vector.load %arg1[%c0, %c0_0, %c0_1] : memref<1x16x128xf32, #tpu.memory_space<vmem>>, vector<1x16x128xf32>
    %1 = vector.shape_cast %0 : vector<1x16x128xf32> to vector<16x128xf32>
    %cst = arith.constant 0.000000e+00 : f32
    %2 = vector.broadcast %cst : f32 to vector<1x128xf32>
    %c0_2 = arith.constant 0 : index
    %c0_3 = arith.constant 0 : index
    %3 = vector.load %arg9[%c0_2, %c0_3] : memref<48x128xf32, #tpu.memory_space<vmem>>, vector<1x128xf32>
    tpu.vector_store %arg9[%c0_2, %c0_3], %2 {strides = array<i32>} : memref<48x128xf32, #tpu.memory_space<vmem>>, vector<1x128xf32>,
    %4 = vector.extract_strided_slice %1 {offsets = [0, 0], sizes = [15, 128], strides = [1, 1]} : vector<16x128xf32> to vector<15x128xf32>
    %c1 = arith.constant 1 : index
    %c0_4 = arith.constant 0 : index
    %5 = vector.load %arg9[%c1, %c0_4] : memref<48x128xf32, #tpu.memory_space<vmem>>, vector<15x128xf32>
    tpu.vector_store %arg9[%c1, %c0_4], %4 {strides = array<i32>} : memref<48x128xf32, #tpu.memory_space<vmem>>, vector<15x128xf32>,
    %c16 = arith.constant 16 : index
    %c0_5 = arith.constant 0 : index
    %6 = vector.load %arg9[%c16, %c0_5] : memref<48x128xf32, #tpu.memory_space<vmem>>, vector<16x128xf32>
    tpu.vector_store %arg9[%c16, %c0_5], %1 {strides = array<i32>} : memref<48x128xf32, #tpu.memory_space<vmem>>, vector<16x128xf32>,
    %7 = vector.extract_strided_slice %1 {offsets = [1, 0], sizes = [15, 128], strides = [1, 1]} : vector<16x128xf32> to vector<15x128xf32>
    %c32 = arith.constant 32 : index
    %c0_6 = arith.constant 0 : index
    %8 = vector.load %arg9[%c32, %c0_6] : memref<48x128xf32, #tpu.memory_space<vmem>>, vector<15x128xf32>
    tpu.vector_store %arg9[%c32, %c0_6], %7 {strides = array<i32>} : memref<48x128xf32, #tpu.memory_space<vmem>>, vector<15x128xf32>,
    %c47 = arith.constant 47 : index
    %c0_7 = arith.constant 0 : index
    %9 = vector.load %arg9[%c47, %c0_7] : memref<48x128xf32, #tpu.memory_space<vmem>>, vector<1x128xf32>
    tpu.vector_store %arg9[%c47, %c0_7], %2 {strides = array<i32>} : memref<48x128xf32, #tpu.memory_space<vmem>>, vector<1x128xf32>,
    %c0_8 = arith.constant 0 : index
    %c0_9 = arith.constant 0 : index
    %10 = vector.load %arg9[%c0_8, %c0_9] : memref<48x128xf32, #tpu.memory_space<vmem>>, vector<16x128xf32>
    %c0_10 = arith.constant 0 : index
    %c0_11 = arith.constant 0 : index
    %c0_12 = arith.constant 0 : index
    %11 = vector.load %arg2[%c0_10, %c0_11, %c0_12] : memref<3x128x256xf32, #tpu.memory_space<vmem>>, vector<1x128x256xf32>
    %12 = vector.shape_cast %11 : vector<1x128x256xf32> to vector<128x256xf32>
    %cst_13 = arith.constant dense<0.000000e+00> : vector<16x256xf32>
    %13 = tpu.matmul %10, %12, %cst_13 {dimension_numbers = #tpu.dot_dimension_numbers<[1], [0], [0], [1], [0, 0, 1, 1], [], []>} : vector<16x128xf32>, vector<128x256xf32>, vector<16x256xf32> -> vector<16x256xf32>
    %c16_14 = arith.constant 16 : index
    %c0_15 = arith.constant 0 : index
    %14 = vector.load %arg9[%c16_14, %c0_15] : memref<48x128xf32, #tpu.memory_space<vmem>>, vector<16x128xf32>
    %c1_16 = arith.constant 1 : index
    %c0_17 = arith.constant 0 : index
    %c0_18 = arith.constant 0 : index
    %15 = vector.load %arg2[%c1_16, %c0_17, %c0_18] : memref<3x128x256xf32, #tpu.memory_space<vmem>>, vector<1x128x256xf32>
    %16 = vector.shape_cast %15 : vector<1x128x256xf32> to vector<128x256xf32>
    %cst_19 = arith.constant dense<0.000000e+00> : vector<16x256xf32>
    %17 = tpu.matmul %14, %16, %cst_19 {dimension_numbers = #tpu.dot_dimension_numbers<[1], [0], [0], [1], [0, 0, 1, 1], [], []>} : vector<16x128xf32>, vector<128x256xf32>, vector<16x256xf32> -> vector<16x256xf32>
    %18 = arith.addf %13, %17 : vector<16x256xf32>
    %c32_20 = arith.constant 32 : index
    %c0_21 = arith.constant 0 : index
    %19 = vector.load %arg9[%c32_20, %c0_21] : memref<48x128xf32, #tpu.memory_space<vmem>>, vector<16x128xf32>
    %c2 = arith.constant 2 : index
    %c0_22 = arith.constant 0 : index
    %c0_23 = arith.constant 0 : index
    %20 = vector.load %arg2[%c2, %c0_22, %c0_23] : memref<3x128x256xf32, #tpu.memory_space<vmem>>, vector<1x128x256xf32>
    %21 = vector.shape_cast %20 : vector<1x128x256xf32> to vector<128x256xf32>
    %cst_24 = arith.constant dense<0.000000e+00> : vector<16x256xf32>
    %22 = tpu.matmul %19, %21, %cst_24 {dimension_numbers = #tpu.dot_dimension_numbers<[1], [0], [0], [1], [0, 0, 1, 1], [], []>} : vector<16x128xf32>, vector<128x256xf32>, vector<16x256xf32> -> vector<16x256xf32>
    %23 = arith.addf %18, %22 : vector<16x256xf32>
    %c0_25 = arith.constant 0 : index
    %c0_26 = arith.constant 0 : index
    %24 = vector.load %arg3[%c0_25, %c0_26] : memref<1x256xf32, #tpu.memory_space<vmem>>, vector<1x256xf32>
    %25 = vector.broadcast %24 : vector<1x256xf32> to vector<16x256xf32>
    %26 = arith.addf %23, %25 : vector<16x256xf32>
    %27 = vector.extract_strided_slice %26 {offsets = [0, 0], sizes = [16, 128], strides = [1, 1]} : vector<16x256xf32> to vector<16x128xf32>
    %c16_27 = arith.constant 16 : index
    %c0_28 = arith.constant 0 : index
    %28 = vector.load %arg10[%c16_27, %c0_28] : memref<64x128xf32, #tpu.memory_space<vmem>>, vector<16x128xf32>
    tpu.vector_store %arg10[%c16_27, %c0_28], %27 {strides = array<i32>} : memref<64x128xf32, #tpu.memory_space<vmem>>, vector<16x128xf32>,
    %29 = vector.extract_strided_slice %26 {offsets = [0, 128], sizes = [16, 128], strides = [1, 1]} : vector<16x256xf32> to vector<16x128xf32>
    %c32_29 = arith.constant 32 : index
    %c0_30 = arith.constant 0 : index
    %30 = vector.load %arg10[%c32_29, %c0_30] : memref<64x128xf32, #tpu.memory_space<vmem>>, vector<16x128xf32>
    tpu.vector_store %arg10[%c32_29, %c0_30], %29 {strides = array<i32>} : memref<64x128xf32, #tpu.memory_space<vmem>>, vector<16x128xf32>,
    %cst_31 = arith.constant 0.000000e+00 : f32
    %31 = vector.broadcast %cst_31 : f32 to vector<1x128xf32>
    %32 = vector.extract_strided_slice %26 {offsets = [0, 128], sizes = [16, 128], strides = [1, 1]} : vector<16x256xf32> to vector<16x128xf32>
    %33 = vector.extract_strided_slice %26 {offsets = [0, 0], sizes = [16, 128], strides = [1, 1]} : vector<16x256xf32> to vector<16x128xf32>
    %c0_32 = arith.constant 0 : index
    %c0_33 = arith.constant 0 : index
    %34 = vector.load %arg10[%c0_32, %c0_33] : memref<64x128xf32, #tpu.memory_space<vmem>>, vector<1x128xf32>
    tpu.vector_store %arg10[%c0_32, %c0_33], %31 {strides = array<i32>} : memref<64x128xf32, #tpu.memory_space<vmem>>, vector<1x128xf32>,
    %35 = vector.extract_strided_slice %32 {offsets = [0, 0], sizes = [15, 128], strides = [1, 1]} : vector<16x128xf32> to vector<15x128xf32>
    %c1_34 = arith.constant 1 : index
    %c0_35 = arith.constant 0 : index
    %36 = vector.load %arg10[%c1_34, %c0_35] : memref<64x128xf32, #tpu.memory_space<vmem>>, vector<15x128xf32>
    tpu.vector_store %arg10[%c1_34, %c0_35], %35 {strides = array<i32>} : memref<64x128xf32, #tpu.memory_space<vmem>>, vector<15x128xf32>,
    %37 = vector.extract_strided_slice %33 {offsets = [1, 0], sizes = [15, 128], strides = [1, 1]} : vector<16x128xf32> to vector<15x128xf32>
    %c48 = arith.constant 48 : index
    %c0_36 = arith.constant 0 : index
    %38 = vector.load %arg10[%c48, %c0_36] : memref<64x128xf32, #tpu.memory_space<vmem>>, vector<15x128xf32>
    tpu.vector_store %arg10[%c48, %c0_36], %37 {strides = array<i32>} : memref<64x128xf32, #tpu.memory_space<vmem>>, vector<15x128xf32>,
    %c63 = arith.constant 63 : index
    %c0_37 = arith.constant 0 : index
    %39 = vector.load %arg10[%c63, %c0_37] : memref<64x128xf32, #tpu.memory_space<vmem>>, vector<1x128xf32>
    tpu.vector_store %arg10[%c63, %c0_37], %31 {strides = array<i32>} : memref<64x128xf32, #tpu.memory_space<vmem>>, vector<1x128xf32>,
    %c0_38 = arith.constant 0 : index
    %c0_39 = arith.constant 0 : index
    %40 = vector.load %arg10[%c0_38, %c0_39] : memref<64x128xf32, #tpu.memory_space<vmem>>, vector<32x128xf32>
    %c0_40 = arith.constant 0 : index
    %c0_41 = arith.constant 0 : index
    %c0_42 = arith.constant 0 : index
    %41 = vector.load %arg4[%c0_40, %c0_41, %c0_42] : memref<3x128x512xf32, #tpu.memory_space<vmem>>, vector<1x128x512xf32>
    %42 = vector.shape_cast %41 : vector<1x128x512xf32> to vector<128x512xf32>
    %cst_43 = arith.constant dense<0.000000e+00> : vector<32x512xf32>
    %43 = tpu.matmul %40, %42, %cst_43 {dimension_numbers = #tpu.dot_dimension_numbers<[1], [0], [0], [1], [0, 0, 1, 1], [], []>} : vector<32x128xf32>, vector<128x512xf32>, vector<32x512xf32> -> vector<32x512xf32>
    %c16_44 = arith.constant 16 : index
    %c0_45 = arith.constant 0 : index
    %44 = vector.load %arg10[%c16_44, %c0_45] : memref<64x128xf32, #tpu.memory_space<vmem>>, vector<32x128xf32>
    %c1_46 = arith.constant 1 : index
    %c0_47 = arith.constant 0 : index
    %c0_48 = arith.constant 0 : index
    %45 = vector.load %arg4[%c1_46, %c0_47, %c0_48] : memref<3x128x512xf32, #tpu.memory_space<vmem>>, vector<1x128x512xf32>
    %46 = vector.shape_cast %45 : vector<1x128x512xf32> to vector<128x512xf32>
    %cst_49 = arith.constant dense<0.000000e+00> : vector<32x512xf32>
    %47 = tpu.matmul %44, %46, %cst_49 {dimension_numbers = #tpu.dot_dimension_numbers<[1], [0], [0], [1], [0, 0, 1, 1], [], []>} : vector<32x128xf32>, vector<128x512xf32>, vector<32x512xf32> -> vector<32x512xf32>
    %48 = arith.addf %43, %47 : vector<32x512xf32>
    %c32_50 = arith.constant 32 : index
    %c0_51 = arith.constant 0 : index
    %49 = vector.load %arg10[%c32_50, %c0_51] : memref<64x128xf32, #tpu.memory_space<vmem>>, vector<32x128xf32>
    %c2_52 = arith.constant 2 : index
    %c0_53 = arith.constant 0 : index
    %c0_54 = arith.constant 0 : index
    %50 = vector.load %arg4[%c2_52, %c0_53, %c0_54] : memref<3x128x512xf32, #tpu.memory_space<vmem>>, vector<1x128x512xf32>
    %51 = vector.shape_cast %50 : vector<1x128x512xf32> to vector<128x512xf32>
    %cst_55 = arith.constant dense<0.000000e+00> : vector<32x512xf32>
    %52 = tpu.matmul %49, %51, %cst_55 {dimension_numbers = #tpu.dot_dimension_numbers<[1], [0], [0], [1], [0, 0, 1, 1], [], []>} : vector<32x128xf32>, vector<128x512xf32>, vector<32x512xf32> -> vector<32x512xf32>
    %53 = arith.addf %48, %52 : vector<32x512xf32>
    %c0_56 = arith.constant 0 : index
    %c0_57 = arith.constant 0 : index
    %54 = vector.load %arg5[%c0_56, %c0_57] : memref<1x512xf32, #tpu.memory_space<vmem>>, vector<1x512xf32>
    %55 = vector.broadcast %54 : vector<1x512xf32> to vector<32x512xf32>
    %56 = arith.addf %53, %55 : vector<32x512xf32>
    %57 = vector.extract_strided_slice %56 {offsets = [0, 0], sizes = [16, 512], strides = [1, 1]} : vector<32x512xf32> to vector<16x512xf32>
    %58 = vector.extract_strided_slice %57 {offsets = [0, 0], sizes = [16, 256], strides = [1, 1]} : vector<16x512xf32> to vector<16x256xf32>
    %c16_58 = arith.constant 16 : index
    %c0_59 = arith.constant 0 : index
    %59 = vector.load %arg11[%c16_58, %c0_59] : memref<96x256xf32, #tpu.memory_space<vmem>>, vector<16x256xf32>
    tpu.vector_store %arg11[%c16_58, %c0_59], %58 {strides = array<i32>} : memref<96x256xf32, #tpu.memory_space<vmem>>, vector<16x256xf32>,
    %60 = vector.extract_strided_slice %57 {offsets = [0, 256], sizes = [16, 256], strides = [1, 1]} : vector<16x512xf32> to vector<16x256xf32>
    %c32_60 = arith.constant 32 : index
    %c0_61 = arith.constant 0 : index
    %61 = vector.load %arg11[%c32_60, %c0_61] : memref<96x256xf32, #tpu.memory_space<vmem>>, vector<16x256xf32>
    tpu.vector_store %arg11[%c32_60, %c0_61], %60 {strides = array<i32>} : memref<96x256xf32, #tpu.memory_space<vmem>>, vector<16x256xf32>,
    %62 = vector.extract_strided_slice %56 {offsets = [16, 0], sizes = [16, 512], strides = [1, 1]} : vector<32x512xf32> to vector<16x512xf32>
    %63 = vector.extract_strided_slice %62 {offsets = [0, 0], sizes = [16, 256], strides = [1, 1]} : vector<16x512xf32> to vector<16x256xf32>
    %c48_62 = arith.constant 48 : index
    %c0_63 = arith.constant 0 : index
    %64 = vector.load %arg11[%c48_62, %c0_63] : memref<96x256xf32, #tpu.memory_space<vmem>>, vector<16x256xf32>
    tpu.vector_store %arg11[%c48_62, %c0_63], %63 {strides = array<i32>} : memref<96x256xf32, #tpu.memory_space<vmem>>, vector<16x256xf32>,
    %65 = vector.extract_strided_slice %62 {offsets = [0, 256], sizes = [16, 256], strides = [1, 1]} : vector<16x512xf32> to vector<16x256xf32>
    %c64 = arith.constant 64 : index
    %c0_64 = arith.constant 0 : index
    %66 = vector.load %arg11[%c64, %c0_64] : memref<96x256xf32, #tpu.memory_space<vmem>>, vector<16x256xf32>
    tpu.vector_store %arg11[%c64, %c0_64], %65 {strides = array<i32>} : memref<96x256xf32, #tpu.memory_space<vmem>>, vector<16x256xf32>,
    %cst_65 = arith.constant 0.000000e+00 : f32
    %67 = vector.broadcast %cst_65 : f32 to vector<1x256xf32>
    %68 = vector.extract_strided_slice %56 {offsets = [16, 256], sizes = [16, 256], strides = [1, 1]} : vector<32x512xf32> to vector<16x256xf32>
    %69 = vector.extract_strided_slice %56 {offsets = [0, 0], sizes = [16, 256], strides = [1, 1]} : vector<32x512xf32> to vector<16x256xf32>
    %c0_66 = arith.constant 0 : index
    %c0_67 = arith.constant 0 : index
    %70 = vector.load %arg11[%c0_66, %c0_67] : memref<96x256xf32, #tpu.memory_space<vmem>>, vector<1x256xf32>
    tpu.vector_store %arg11[%c0_66, %c0_67], %67 {strides = array<i32>} : memref<96x256xf32, #tpu.memory_space<vmem>>, vector<1x256xf32>,
    %71 = vector.extract_strided_slice %68 {offsets = [0, 0], sizes = [15, 256], strides = [1, 1]} : vector<16x256xf32> to vector<15x256xf32>
    %c1_68 = arith.constant 1 : index
    %c0_69 = arith.constant 0 : index
    %72 = vector.load %arg11[%c1_68, %c0_69] : memref<96x256xf32, #tpu.memory_space<vmem>>, vector<15x256xf32>
    tpu.vector_store %arg11[%c1_68, %c0_69], %71 {strides = array<i32>} : memref<96x256xf32, #tpu.memory_space<vmem>>, vector<15x256xf32>,
    %73 = vector.extract_strided_slice %69 {offsets = [1, 0], sizes = [15, 256], strides = [1, 1]} : vector<16x256xf32> to vector<15x256xf32>
    %c80 = arith.constant 80 : index
    %c0_70 = arith.constant 0 : index
    %74 = vector.load %arg11[%c80, %c0_70] : memref<96x256xf32, #tpu.memory_space<vmem>>, vector<15x256xf32>
    tpu.vector_store %arg11[%c80, %c0_70], %73 {strides = array<i32>} : memref<96x256xf32, #tpu.memory_space<vmem>>, vector<15x256xf32>,
    %c95 = arith.constant 95 : index
    %c0_71 = arith.constant 0 : index
    %75 = vector.load %arg11[%c95, %c0_71] : memref<96x256xf32, #tpu.memory_space<vmem>>, vector<1x256xf32>
    tpu.vector_store %arg11[%c95, %c0_71], %67 {strides = array<i32>} : memref<96x256xf32, #tpu.memory_space<vmem>>, vector<1x256xf32>,
    %c0_72 = arith.constant 0 : index
    %c0_73 = arith.constant 0 : index
    %76 = vector.load %arg11[%c0_72, %c0_73] : memref<96x256xf32, #tpu.memory_space<vmem>>, vector<64x256xf32>
    %c0_74 = arith.constant 0 : index
    %c0_75 = arith.constant 0 : index
    %c0_76 = arith.constant 0 : index
    %77 = vector.load %arg6[%c0_74, %c0_75, %c0_76] : memref<3x256x256xf32, #tpu.memory_space<vmem>>, vector<1x256x256xf32>
    %78 = vector.shape_cast %77 : vector<1x256x256xf32> to vector<256x256xf32>
    %cst_77 = arith.constant dense<0.000000e+00> : vector<64x256xf32>
    %79 = tpu.matmul %76, %78, %cst_77 {dimension_numbers = #tpu.dot_dimension_numbers<[1], [0], [0], [1], [0, 0, 1, 1], [], []>} : vector<64x256xf32>, vector<256x256xf32>, vector<64x256xf32> -> vector<64x256xf32>
    %c16_78 = arith.constant 16 : index
    %c0_79 = arith.constant 0 : index
    %80 = vector.load %arg11[%c16_78, %c0_79] : memref<96x256xf32, #tpu.memory_space<vmem>>, vector<64x256xf32>
    %c1_80 = arith.constant 1 : index
    %c0_81 = arith.constant 0 : index
    %c0_82 = arith.constant 0 : index
    %81 = vector.load %arg6[%c1_80, %c0_81, %c0_82] : memref<3x256x256xf32, #tpu.memory_space<vmem>>, vector<1x256x256xf32>
    %82 = vector.shape_cast %81 : vector<1x256x256xf32> to vector<256x256xf32>
    %cst_83 = arith.constant dense<0.000000e+00> : vector<64x256xf32>
    %83 = tpu.matmul %80, %82, %cst_83 {dimension_numbers = #tpu.dot_dimension_numbers<[1], [0], [0], [1], [0, 0, 1, 1], [], []>} : vector<64x256xf32>, vector<256x256xf32>, vector<64x256xf32> -> vector<64x256xf32>
    %84 = arith.addf %79, %83 : vector<64x256xf32>
    %c32_84 = arith.constant 32 : index
    %c0_85 = arith.constant 0 : index
    %85 = vector.load %arg11[%c32_84, %c0_85] : memref<96x256xf32, #tpu.memory_space<vmem>>, vector<64x256xf32>
    %c2_86 = arith.constant 2 : index
    %c0_87 = arith.constant 0 : index
    %c0_88 = arith.constant 0 : index
    %86 = vector.load %arg6[%c2_86, %c0_87, %c0_88] : memref<3x256x256xf32, #tpu.memory_space<vmem>>, vector<1x256x256xf32>
    %87 = vector.shape_cast %86 : vector<1x256x256xf32> to vector<256x256xf32>
    %cst_89 = arith.constant dense<0.000000e+00> : vector<64x256xf32>
    %88 = tpu.matmul %85, %87, %cst_89 {dimension_numbers = #tpu.dot_dimension_numbers<[1], [0], [0], [1], [0, 0, 1, 1], [], []>} : vector<64x256xf32>, vector<256x256xf32>, vector<64x256xf32> -> vector<64x256xf32>
    %89 = arith.addf %84, %88 : vector<64x256xf32>
    %c0_90 = arith.constant 0 : index
    %c0_91 = arith.constant 0 : index
    %90 = vector.load %arg7[%c0_90, %c0_91] : memref<1x256xf32, #tpu.memory_space<vmem>>, vector<1x256xf32>
    %91 = vector.broadcast %90 : vector<1x256xf32> to vector<64x256xf32>
    %92 = arith.addf %89, %91 : vector<64x256xf32>
    %c0_92 = arith.constant 0 : index
    %c0_93 = arith.constant 0 : index
    %c0_94 = arith.constant 0 : index
    %93 = vector.load %arg8[%c0_92, %c0_93, %c0_94] : memref<1x64x256xf32, #tpu.memory_space<vmem>>, vector<1x64x256xf32>
    %94 = vector.shape_cast %93 : vector<1x64x256xf32> to vector<64x256xf32>
    %95 = vector.shape_cast %92 : vector<64x256xf32> to vector<1x64x256xf32>
    tpu.vector_store %arg8[%c0_92, %c0_93, %c0_94], %95 {strides = array<i32>} : memref<1x64x256xf32, #tpu.memory_space<vmem>>, vector<1x64x256xf32>,
    return
  }
  func.func @transform_0(%arg0: i32) -> (i32, i32, i32) {
    %c0_i32 = arith.constant 0 : i32
    %c0_i32_0 = arith.constant 0 : i32
    %c0_i32_1 = arith.constant 0 : i32
    return %arg0, %c0_i32, %c0_i32_0 : i32, i32, i32
  }
  func.func @transform_1(%arg0: i32) -> (i32, i32, i32) {
    %c0_i32 = arith.constant 0 : i32
    %c0_i32_0 = arith.constant 0 : i32
    %c0_i32_1 = arith.constant 0 : i32
    %c0_i32_2 = arith.constant 0 : i32
    return %c0_i32, %c0_i32_0, %c0_i32_1 : i32, i32, i32
  }
  func.func @transform_2(%arg0: i32) -> (i32, i32) {
    %c0_i32 = arith.constant 0 : i32
    %c0_i32_0 = arith.constant 0 : i32
    %c0_i32_1 = arith.constant 0 : i32
    return %c0_i32, %c0_i32_0 : i32, i32
  }
  func.func @transform_3(%arg0: i32) -> (i32, i32, i32) {
    %c0_i32 = arith.constant 0 : i32
    %c0_i32_0 = arith.constant 0 : i32
    %c0_i32_1 = arith.constant 0 : i32
    %c0_i32_2 = arith.constant 0 : i32
    return %c0_i32, %c0_i32_0, %c0_i32_1 : i32, i32, i32
  }
  func.func @transform_4(%arg0: i32) -> (i32, i32) {
    %c0_i32 = arith.constant 0 : i32
    %c0_i32_0 = arith.constant 0 : i32
    %c0_i32_1 = arith.constant 0 : i32
    return %c0_i32, %c0_i32_0 : i32, i32
  }
  func.func @transform_5(%arg0: i32) -> (i32, i32, i32) {
    %c0_i32 = arith.constant 0 : i32
    %c0_i32_0 = arith.constant 0 : i32
    %c0_i32_1 = arith.constant 0 : i32
    %c0_i32_2 = arith.constant 0 : i32
    return %c0_i32, %c0_i32_0, %c0_i32_1 : i32, i32, i32
  }
  func.func @transform_6(%arg0: i32) -> (i32, i32) {
    %c0_i32 = arith.constant 0 : i32
    %c0_i32_0 = arith.constant 0 : i32
    %c0_i32_1 = arith.constant 0 : i32
    return %c0_i32, %c0_i32_0 : i32, i32
  }
  func.func @transform_7(%arg0: i32) -> (i32, i32, i32) {
    %c0_i32 = arith.constant 0 : i32
    %c0_i32_0 = arith.constant 0 : i32
    %c0_i32_1 = arith.constant 0 : i32
    return %arg0, %c0_i32, %c0_i32_0 : i32, i32, i32
  }
}

</mosaic_0001>

<bundles_post_ra>
// kernel: prog_pixel_shuffle_forward.1
= control target key start
LH: loop header
LB: loop body
LE: loop exit
PB: predicated region body
PF: predicated region fallthrough
CT: control target
= control target key end

     0   :  { %12 = vsyncpa [#allocation6], 0  ;;  %s3374_s0 = inlined_call_operand.vmem [shape: f32[2,16,128], index: 0, kind: input, shape index: {}]   ;;  %s3375_s1 = inlined_call_operand.hbm [shape: f32[3,128,256], index: 1, kind: input, shape index: {}]   ;;  %s3376_s2 = inlined_call_operand.vmem [shape: f32[1,256], index: 2, kind: input, shape index: {}]   ;;  %s3377_s3 = inlined_call_operand.hbm [shape: f32[3,128,512], index: 3, kind: input, shape index: {}]   ;;  %s3378_s4 = inlined_call_operand.vmem [shape: f32[1,512], index: 4, kind: input, shape index: {}]   ;;  %s3379_s5 = inlined_call_operand.hbm [shape: f32[3,256,256], index: 5, kind: input, shape index: {}]   ;;  %s3380_s6 = inlined_call_operand.vmem [shape: f32[1,256], index: 6, kind: input, shape index: {}]   ;;  %s3381_s7 = inlined_call_operand.vmem [shape: f32[2,64,256], index: 7, kind: output, shape index: {}]  }
   0x1   :  { %13 = vsyncpa [#allocation8], 0  ;;  %s3031_s24 = smov 0  }
   0x2 LB: > { %s2983_s25 = smov [#allocation7]   ;;  %s3037_s27 = sadd.s32 4294967295, %s2981_s24   ;;  %s2981_s24 = sphi %s3031_s24, %s19_s24  }
   0x3   : > { %s230_s26 = sshll.u32 %s2983_s25, 4  ;;  %p2270_p0 = scmp.ge.s32.totalorder %s2981_s24, 1  ;;  %s3046_s26 = int_to_ptr.vmem [resolvable:$true] %s230_s26 }
   0x4   : > { %p202_p1 = scmp.lt.s32.totalorder %s2981_s24, 3  ;;  %p3382_p2 = scmp.eq.s32.totalorder %s3037_s27, 0 }
   0x5   : > { %s2984_s29 = smov [#allocation5]   ;;  %s2985_s9 = smov [#allocation9]  }
   0x6   : > { %p3042_p3 = pnand %p2270_p0, %p202_p1  ;;  %s214_s30 = sshll.u32 %s2984_s29, 4  ;;  %s3050_s30 = int_to_ptr.vmem [resolvable:$true] %s214_s30 }
   0x7   : > { %s3058_s10 = sshll.u32 %s2985_s9, 4  ;;  %s2883_s13 = scalar_lea.hbm %s3377_s3, 24576  ;;  %s247_s10 = int_to_ptr.vmem [resolvable:$true] %s3058_s10 }
   0x8   : > { %s3384_s28 = scalar_select %p3042_p3, 1, 0 }
   0x9   : > { %p2851_p4 = pneg %p3042_p3  ;;  %p2884_p6 = scmp.ne.s32.totalorder %s3377_s3, %s2883_s13 }
   0xa   : > { %p2890_p10 = scmp.lt.u32.totalorder %s2883_s13, %s3377_s3 }
   0xb   : > { %p3054_p5 = pnand %p3382_p2, %p2851_p4 }
   0xd   : > { %p3068_p7 = pneg %p3054_p5 }
   0xf   : > { %p2886_p8 = pnand %p3068_p7, %p2884_p6 }
  0x11   : > { %p2887_p9 = pneg %p2886_p8 }
  0x13   : > { %p2892_p11 = pnand %p2890_p10, %p2887_p9 }
  0x15   : > { %2895 = shalt.err (!%p2892_p11)
}
  0x16   : > { %s2896_s19 = scalar_lea.vmem %s3046_s26, 24576  ;;  %p2904_p1 = scmp.lt.s32.totalorder %s3046_s26, %s3046_s26 }
  0x17   : > { %p2897_p12 = scmp.ne.s32.totalorder %s3046_s26, %s2896_s19  ;;  %p2905_p4 = scmp.lt.s32.totalorder %s2896_s19, %s2896_s19 }
  0x19   : > { %p2899_p13 = pnand %p2897_p12, %p3068_p7  ;;  %p2906_p6 = por %p2905_p4, %p2904_p1 }
  0x1b   : > { %p2900_p0 = pneg %p2899_p13 }
  0x1d   : > { %p2907_p8 = pnand %p2906_p6, %p2900_p0 }
  0x1f   : > { %2910 = shalt.err (!%p2907_p8)
}
  0x20   : > { %s2986_s20 = smov 512   ;;  %s2987_s21 = smov 32  }
  0x21   : > { %2857 = dma.hbm_to_vmem [thread:$0]  (!%p3054_p5), %s3377_s3, 24576, %s3046_s26, [#allocation8], %s2986_s20, %s2986_s20, %s2987_s21  }
  0x22   : > { %s2911_s9 = scalar_lea.hbm %s3375_s1, 12288 }
  0x23   : > { %p2912_p9 = scmp.ne.s32.totalorder %s3375_s1, %s2911_s9  ;;  %p2918_p12 = scmp.lt.u32.totalorder %s2911_s9, %s3375_s1 }
  0x25   : > { %p2914_p10 = pnand %p2912_p9, %p3068_p7 }
  0x27   : > { %p2915_p11 = pneg %p2914_p10 }
  0x29   : > { %p2920_p13 = pnand %p2918_p12, %p2915_p11 }
  0x2b   : > { %2923 = shalt.err (!%p2920_p13)
}
  0x2c   : > { %s2924_s26 = scalar_lea.vmem %s3050_s30, 12288  ;;  %p2932_p6 = scmp.lt.s32.totalorder %s3050_s30, %s3050_s30 }
  0x2d   : > { %p2925_p0 = scmp.ne.s32.totalorder %s3050_s30, %s2924_s26  ;;  %p2933_p8 = scmp.lt.s32.totalorder %s2924_s26, %s2924_s26 }
  0x2f   : > { %p2927_p1 = pnand %p2925_p0, %p3068_p7  ;;  %p2934_p9 = por %p2933_p8, %p2932_p6 }
  0x31   : > { %p2928_p4 = pneg %p2927_p1 }
  0x33   : > { %p2935_p10 = pnand %p2934_p9, %p2928_p4 }
  0x35   : > { %2938 = shalt.err (!%p2935_p10)
}
  0x36   : > { %s2988_s15 = smov 256   ;;  %s2989_s17 = smov 16  }
  0x37   : > { %2854 = dma.hbm_to_vmem [thread:$0]  (!%p3054_p5), %s3375_s1, 12288, %s3050_s30, [#allocation6], %s2988_s15, %s2988_s15, %s2989_s17  }
  0x38   : > { %s2939_s22 = scalar_lea.hbm %s3379_s5, 24576 }
  0x39   : > { %p2940_p11 = scmp.ne.s32.totalorder %s3379_s5, %s2939_s22  ;;  %p2946_p0 = scmp.lt.u32.totalorder %s2939_s22, %s3379_s5 }
  0x3b   : > { %p2942_p12 = pnand %p2940_p11, %p3068_p7 }
  0x3d   : > { %p2943_p13 = pneg %p2942_p12 }
  0x3f   : > { %p2948_p1 = pnand %p2946_p0, %p2943_p13 }
  0x41   : > { %2951 = shalt.err (!%p2948_p1)
}
  0x42   : > { %s2952_s11 = scalar_lea.vmem %s247_s10, 24576  ;;  %p2960_p9 = scmp.lt.s32.totalorder %s247_s10, %s247_s10 }
  0x43   : > { %p2953_p4 = scmp.ne.s32.totalorder %s247_s10, %s2952_s11  ;;  %p2961_p10 = scmp.lt.s32.totalorder %s2952_s11, %s2952_s11 }
  0x45   : > { %p2955_p6 = pnand %p2953_p4, %p3068_p7  ;;  %p2962_p2 = por %p2961_p10, %p2960_p9 }
  0x47   : > { %p2956_p8 = pneg %p2955_p6 }
  0x49   : > { %p2963_p3 = pnand %p2962_p2, %p2956_p8 }
  0x4b   : > { %2966 = shalt.err (!%p2963_p3)
}
  0x4c   : > { %2860 = dma.hbm_to_vmem [thread:$0]  (!%p3054_p5), %s3379_s5, 24576, %s247_s10, [#allocation8], %s2988_s15, %s2988_s15, %s2989_s17  }
  0x4d   : > { %p3387_p11 = scmp.ne.s32.totalorder %s3384_s28, 0 }
  0x4e   : > { %p3388_p12 = scmp.eq.s32.totalorder (!%p3387_p11), %s3037_s27, 0 }
  0x4f   : > { %273 = sbr.rel (%p3387_p11) target bundleno = 1090 (0x442), region = 48 }
  0x56   : > { %2972 = dma.done.wait (%p3388_p12), [#allocation6], 12288   ;;  %p3389_p7 = pmov %p3388_p12 }
  0x58   : > { %2974 = vsyncadd (%p3389_p7), [#allocation6], 4294955008  ;;  %p3390_p13 = pmov %p3389_p7 }
  0x59   : > { %p3391_p2 = pmov %p3389_p7 }
  0x5a   : > { %2976 = dma.done.wait (%p3390_p13), [#allocation8], 49152  }
  0x5b   : > { %2978 = vsyncadd (%p3391_p2), [#allocation8], 4294918144  ;;  %v2990_v0 = vmov 0.0   ;;  %p313_p3 = scmp.lt.s32.totalorder %s3037_s27, 1  ;;  %v371_v1 = vld [vmem:[#allocation5 + $0x108] sm:$0xff]  ;;  %v373_v2 = vld [vmem:[#allocation5 + $0x118] sm:$0xff] }
  0x5c   : > { %466 = vmatprep.mubr.f32.mxu1 %v2990_v0  ;;  %325 = vst [vmem:[#allocation2] sm:$0x1] %v2990_v0  ;;  %332 = vst [vmem:[#allocation2 + $0x2f] sm:$0x1] %v2990_v0  ;;  %655 = vmatprep.mubr.f32.mxu0 %v2990_v0  ;;  %v370_v3 = vld [vmem:[#allocation5 + $0x100] sm:$0xff]  ;;  %v2287_v4 = vpack.c.bf16 %v373_v2, %v371_v1  ;;  %v372_v5 = vld [vmem:[#allocation5 + $0x110] sm:$0xff] }
  0x5d   : > { %692 = vst [vmem:[#allocation3] sm:$0x1] %v2990_v0  ;;  %697 = vst [vmem:[#allocation3 + $0x3f] sm:$0x1] %v2990_v0  ;;  %v375_v6 = vld [vmem:[#allocation5 + $0x128] sm:$0xff]  ;;  %v377_v7 = vld [vmem:[#allocation5 + $0x138] sm:$0xff]  ;;  %v2289_v8 = vpack.c.bf16 %v372_v5, %v370_v3 }
  0x5e   : > { %v2291_v9 = vpack.c.bf16 %v377_v7, %v375_v6  ;;  %v374_v10 = vld [vmem:[#allocation5 + $0x120] sm:$0xff]  ;;  %v376_v11 = vld [vmem:[#allocation5 + $0x130] sm:$0xff]  ;;  %v379_v12 = vld [vmem:[#allocation5 + $0x148] sm:$0xff]  ;;  %s3393_s27 = smov (!%p313_p3, %s3037_s27), 1  ;;  %2288 = vmatprep.subr.bf16.mxu1 %v2287_v4  ;;  %vm1535_vm1 = vcmask 1046528   ;;  %vm1516_vm2 = vcmask 1040384  }
  0x5f   : > { %v381_v13 = vld [vmem:[#allocation5 + $0x158] sm:$0xff]  ;;  %2290 = vmatpush1.bf16.msra.mxu1 %v2289_v8  ;;  %v2293_v14 = vpack.c.bf16 %v376_v11, %v374_v10  ;;  %v378_v16 = vld [vmem:[#allocation5 + $0x140] sm:$0xff]  ;;  %v380_v17 = vld [vmem:[#allocation5 + $0x150] sm:$0xff]  ;;  %s2285_s28 = sshll.u32 %s3393_s27, 4  ;;  %s2286_s19 = sshll.u32 %s3393_s27, 7 }
  0x60   : > { %2292 = vmatprep.subr.bf16.mxu1 %v2291_v9  ;;  %v2295_v15 = vpack.c.bf16 %v381_v13, %v379_v12  ;;  %v383_v18 = vld [vmem:[#allocation5 + $0x168] sm:$0xff]  ;;  %v385_v19 = vld [vmem:[#allocation5 + $0x178] sm:$0xff]  ;;  %v2297_v20 = vpack.c.bf16 %v380_v17, %v378_v16  ;;  %v382_v22 = vld [vmem:[#allocation5 + $0x160] sm:$0xff]  ;;  %s3155_s16 = scalar_lea.vmem %s3374_s0, %s2285_s28  ;;  %s3353_s22 = scalar_lea.vmem %s3381_s7, %s2286_s19 }
  0x61   : > { %v2299_v21 = vpack.c.bf16 %v385_v19, %v383_v18  ;;  %v384_v23 = vld [vmem:[#allocation5 + $0x170] sm:$0xff]  ;;  %v387_v24 = vld [vmem:[#allocation5 + $0x188] sm:$0xff]  ;;  %v389_v25 = vld [vmem:[#allocation5 + $0x198] sm:$0xff] }
  0x62   : > { %v560_v26 = vld [vmem:[#allocation5 + $0x208] sm:$0xff]  ;;  %v562_v27 = vld [vmem:[#allocation5 + $0x218] sm:$0xff]  ;;  %v2301_v28 = vpack.c.bf16 %v384_v23, %v382_v22  ;;  %v559_v30 = vld [vmem:[#allocation5 + $0x200] sm:$0xff]  ;;  %v2303_v33 = vpack.c.bf16 %v389_v25, %v387_v24 }
  0x63   : > { %2294 = vmatpush1.bf16.msra.mxu1 %v2293_v14  ;;  %v2351_v29 = vpack.c.bf16 %v562_v27, %v560_v26  ;;  %v561_v31 = vld [vmem:[#allocation5 + $0x210] sm:$0xff]  ;;  %v386_v34 = vld [vmem:[#allocation5 + $0x180] sm:$0xff]  ;;  %v564_v37 = vld [vmem:[#allocation5 + $0x228] sm:$0xff] }
  0x64   : > { %2296 = vmatprep.subr.bf16.mxu1 %v2295_v15  ;;  %v3158_v32 = vld [vmem:[%s3155_s16] sm:$0xff]  ;;  %v2353_v36 = vpack.c.bf16 %v561_v31, %v559_v30  ;;  %v391_v38 = vld [vmem:[#allocation5 + $0x1a8] sm:$0xff]  ;;  %v393_v39 = vld [vmem:[#allocation5 + $0x1b8] sm:$0xff] }
  0x65   : > { %v388_v35 = vld [vmem:[#allocation5 + $0x190] sm:$0xff]  ;;  %326 = vst [vmem:[#allocation2 + $0x1] sm:$0xff] %v3158_v32  ;;  %330 = vst [vmem:[#allocation2 + $0x1f] sm:$0xfe] %v3158_v32  ;;  %2352 = vmatprep.subr.bf16.mxu0 %v2351_v29  ;;  %v566_v40 = vld [vmem:[#allocation5 + $0x238] sm:$0xff]  ;;  %v2307_v48 = vpack.c.bf16 %v393_v39, %v391_v38 }
  0x66   : > { %2354 = vmatpush1.bf16.msra.mxu0 %v2353_v36  ;;  %v2355_v41 = vpack.c.bf16 %v566_v40, %v564_v37  ;;  %v563_v42 = vld [vmem:[#allocation5 + $0x220] sm:$0xff]  ;;  %v565_v43 = vld [vmem:[#allocation5 + $0x230] sm:$0xff]  ;;  %v2305_v44 = vpack.c.bf16 %v388_v35, %v386_v34  ;;  %v568_v46 = vld [vmem:[#allocation5 + $0x248] sm:$0xff] }
  0x67   : > { %2298 = vmatpush1.bf16.msra.mxu1 %v2297_v20  ;;  %v2357_v45 = vpack.c.bf16 %v565_v43, %v563_v42  ;;  %v570_v47 = vld [vmem:[#allocation5 + $0x258] sm:$0xff]  ;;  %v390_v49 = vld [vmem:[#allocation5 + $0x1a0] sm:$0xff]  ;;  %v392_v50 = vld [vmem:[#allocation5 + $0x1b0] sm:$0xff] }
  0x68   : > { %2300 = vmatprep.subr.bf16.mxu1 %v2299_v21  ;;  %2356 = vmatprep.subr.bf16.mxu0 %v2355_v41  ;;  %v2359_v51 = vpack.c.bf16 %v570_v47, %v568_v46  ;;  %v567_v52 = vld [vmem:[#allocation5 + $0x240] sm:$0xff]  ;;  %v395_v53 = vld [vmem:[#allocation5 + $0x1c8] sm:$0xff]  ;;  %v397_v54 = vld [vmem:[#allocation5 + $0x1d8] sm:$0xff]  ;;  %v2309_v59 = vpack.c.bf16 %v392_v50, %v390_v49 }
  0x69   : > { %v569_v55 = vld [vmem:[#allocation5 + $0x250] sm:$0xff]  ;;  %v572_v57 = vld [vmem:[#allocation5 + $0x268] sm:$0xff]  ;;  %v574_v58 = vld [vmem:[#allocation5 + $0x278] sm:$0xff]  ;;  %v2311_v63 = vpack.c.bf16 %v397_v54, %v395_v53 }
  0x6a   : > { %2358 = vmatpush1.bf16.msra.mxu0 %v2357_v45  ;;  %v2361_v56 = vpack.c.bf16 %v569_v55, %v567_v52  ;;  %v2363_v60 = vpack.c.bf16 %v574_v58, %v572_v57  ;;  %v571_v61 = vld [vmem:[#allocation5 + $0x260] sm:$0xff]  ;;  %v573_v62 = vld [vmem:[#allocation5 + $0x270] sm:$0xff]  ;;  %v576_v3 = vld [vmem:[#allocation5 + $0x288] sm:$0xff] }
  0x6b   : > { %2302 = vmatpush1.bf16.msra.mxu1 %v2301_v28  ;;  %2360 = vmatprep.subr.bf16.mxu0 %v2359_v51  ;;  %v394_v1 = vld [vmem:[#allocation5 + $0x1c0] sm:$0xff]  ;;  %v396_v2 = vld [vmem:[#allocation5 + $0x1d0] sm:$0xff]  ;;  %v399_v4 = vld [vmem:[#allocation5 + $0x1e8] sm:$0xff]  ;;  %v2365_v7 = vpack.c.bf16 %v573_v62, %v571_v61 }
  0x6c   : > { %2304 = vmatprep.subr.bf16.mxu1 %v2303_v33  ;;  %v401_v5 = vld [vmem:[#allocation5 + $0x1f8] sm:$0xff]  ;;  %v2313_v8 = vpack.c.bf16 %v396_v2, %v394_v1  ;;  %v398_v9 = vld [vmem:[#allocation5 + $0x1e0] sm:$0xff]  ;;  %v577_v12 = vld [vmem:[#allocation5 + $0x290] sm:$0xff] }
  0x6d   : > { %v578_v6 = vld [vmem:[#allocation5 + $0x298] sm:$0xff]  ;;  %v575_v11 = vld [vmem:[#allocation5 + $0x280] sm:$0xff]  ;;  %v2315_v13 = vpack.c.bf16 %v401_v5, %v399_v4  ;;  %v400_v14 = vld [vmem:[#allocation5 + $0x1f0] sm:$0xff] }
  0x6e   : > { %2362 = vmatpush1.bf16.msra.mxu0 %v2361_v56  ;;  %v2367_v10 = vpack.c.bf16 %v578_v6, %v576_v3  ;;  %v580_v15 = vld [vmem:[#allocation5 + $0x2a8] sm:$0xff]  ;;  %v582_v16 = vld [vmem:[#allocation5 + $0x2b8] sm:$0xff]  ;;  %v2369_v19 = vpack.c.bf16 %v577_v12, %v575_v11  ;;  %v2317_v20 = vpack.c.bf16 %v400_v14, %v398_v9  ;;  %v335_v21 = vld [vmem:[#allocation5] sm:$0xff] }
  0x6f   : > { %2306 = vmatpush1.bf16.msra.mxu1 %v2305_v44  ;;  %2364 = vmatprep.subr.bf16.mxu0 %v2363_v60  ;;  %v336_v17 = vld [vmem:[#allocation5 + $0x8] sm:$0xff]  ;;  %v338_v18 = vld [vmem:[#allocation5 + $0x18] sm:$0xff]  ;;  %v2371_v22 = vpack.c.bf16 %v582_v16, %v580_v15  ;;  %v579_v23 = vld [vmem:[#allocation5 + $0x2a0] sm:$0xff] }
  0x70   : > { %2308 = vmatprep.subr.bf16.mxu1 %v2307_v48  ;;  %v581_v24 = vld [vmem:[#allocation5 + $0x2b0] sm:$0xff]  ;;  %v2319_v25 = vpack.c.bf16 %v338_v18, %v336_v17  ;;  %v584_v27 = vld [vmem:[#allocation5 + $0x2c8] sm:$0xff]  ;;  %v586_v28 = vld [vmem:[#allocation5 + $0x2d8] sm:$0xff] }
  0x71   : > { %v337_v26 = vld [vmem:[#allocation5 + $0x10] sm:$0xff]  ;;  %v340_v29 = vld [vmem:[#allocation5 + $0x28] sm:$0xff]  ;;  %v342_v30 = vld [vmem:[#allocation5 + $0x38] sm:$0xff]  ;;  %v2373_v33 = vpack.c.bf16 %v581_v24, %v579_v23  ;;  %v2375_v36 = vpack.c.bf16 %v586_v28, %v584_v27 }
  0x72   : > { %2366 = vmatpush1.bf16.msra.mxu0 %v2365_v7  ;;  %v324_v31 = vld [vmem:[%s3155_s16 + $0x8] sm:$0xff]  ;;  %v2321_v34 = vpack.c.bf16 %v337_v26, %v335_v21  ;;  %v339_v35 = vld [vmem:[#allocation5 + $0x20] sm:$0xff]  ;;  %v585_v38 = vld [vmem:[#allocation5 + $0x2d0] sm:$0xff]  ;;  %v2323_v39 = vpack.c.bf16 %v342_v30, %v340_v29 }
  0x73   : > { %2310 = vmatpush1.bf16.msra.mxu1 %v2309_v59  ;;  %2368 = vmatprep.subr.bf16.mxu0 %v2367_v10  ;;  %327 = vst [vmem:[#allocation2 + $0x9] sm:$0x7f] %v324_v31  ;;  %331 = vst [vmem:[#allocation2 + $0x27] sm:$0xff] %v324_v31  ;;  %v583_v37 = vld [vmem:[#allocation5 + $0x2c0] sm:$0xff]  ;;  %v341_v40 = vld [vmem:[#allocation5 + $0x30] sm:$0xff] }
  0x74   : > { %2312 = vmatprep.subr.bf16.mxu1 %v2311_v63  ;;  %v588_v41 = vld [vmem:[#allocation5 + $0x2e8] sm:$0xff]  ;;  %v590_v42 = vld [vmem:[#allocation5 + $0x2f8] sm:$0xff]  ;;  %v2377_v45 = vpack.c.bf16 %v585_v38, %v583_v37  ;;  %v2325_v46 = vpack.c.bf16 %v341_v40, %v339_v35  ;;  %v587_v48 = vld [vmem:[#allocation5 + $0x2e0] sm:$0xff] }
  0x75   : > { %v344_v43 = vld [vmem:[#allocation5 + $0x48] sm:$0xff]  ;;  %v346_v44 = vld [vmem:[#allocation5 + $0x58] sm:$0xff]  ;;  %v2379_v47 = vpack.c.bf16 %v590_v42, %v588_v41  ;;  %v589_v49 = vld [vmem:[#allocation5 + $0x2f0] sm:$0xff] }
  0x76   : > { %2370 = vmatpush1.bf16.msra.mxu0 %v2369_v19  ;;  %v2327_v50 = vpack.c.bf16 %v346_v44, %v344_v43  ;;  %v343_v51 = vld [vmem:[#allocation5 + $0x40] sm:$0xff]  ;;  %v345_v52 = vld [vmem:[#allocation5 + $0x50] sm:$0xff]  ;;  %v348_v53 = vld [vmem:[#allocation5 + $0x68] sm:$0xff]  ;;  %v2381_v55 = vpack.c.bf16 %v589_v49, %v587_v48 }
  0x77   : > { %2314 = vmatpush1.bf16.msra.mxu1 %v2313_v8  ;;  %2372 = vmatprep.subr.bf16.mxu0 %v2371_v22  ;;  %v350_v54 = vld [vmem:[#allocation5 + $0x78] sm:$0xff]  ;;  %v347_v57 = vld [vmem:[#allocation5 + $0x60] sm:$0xff]  ;;  %v349_v58 = vld [vmem:[#allocation5 + $0x70] sm:$0xff] }
  0x78   : > { %2316 = vmatprep.subr.bf16.mxu1 %v2315_v13  ;;  %v2331_v56 = vpack.c.bf16 %v350_v54, %v348_v53  ;;  %v352_v59 = vld [vmem:[#allocation5 + $0x88] sm:$0xff]  ;;  %v354_v60 = vld [vmem:[#allocation5 + $0x98] sm:$0xff]  ;;  %v2333_v62 = vpack.c.bf16 %v349_v58, %v347_v57  ;;  %v351_v1 = vld [vmem:[#allocation5 + $0x80] sm:$0xff] }
  0x79   : > { %v2335_v63 = vpack.c.bf16 %v354_v60, %v352_v59  ;;  %v353_v2 = vld [vmem:[#allocation5 + $0x90] sm:$0xff]  ;;  %v356_v3 = vld [vmem:[#allocation5 + $0xa8] sm:$0xff]  ;;  %v358_v4 = vld [vmem:[#allocation5 + $0xb8] sm:$0xff] }
  0x7a   : > { %2374 = vmatpush1.bf16.msra.mxu0 %v2373_v33  ;;  %v556_v61 = vld [vmem:[#allocation2 + $0x20] sm:$0xff]  ;;  %v557_v5 = vld [vmem:[#allocation2 + $0x28] sm:$0xff]  ;;  %v2337_v6 = vpack.c.bf16 %v353_v2, %v351_v1  ;;  %v2339_v7 = vpack.c.bf16 %v358_v4, %v356_v3  ;;  %v355_v8 = vld [vmem:[#allocation5 + $0xa0] sm:$0xff] }
  0x7b   : > { %2318 = vmatpush1.bf16.msra.mxu1 %v2317_v20  ;;  %2376 = vmatprep.subr.bf16.mxu0 %v2375_v36  ;;  %v357_v9 = vld [vmem:[#allocation5 + $0xb0] sm:$0xff]  ;;  %v360_v10 = vld [vmem:[#allocation5 + $0xc8] sm:$0xff]  ;;  %v362_v11 = vld [vmem:[#allocation5 + $0xd8] sm:$0xff] }
  0x7c   : > { %2320 = vmatprep.subr.bf16.mxu1 %v2319_v25  ;;  %v2341_v12 = vpack.c.bf16 %v357_v9, %v355_v8  ;;  %v2343_v13 = vpack.c.bf16 %v362_v11, %v360_v10  ;;  %v359_v14 = vld [vmem:[#allocation5 + $0xc0] sm:$0xff]  ;;  %v361_v15 = vld [vmem:[#allocation5 + $0xd0] sm:$0xff]  ;;  %v364_v16 = vld [vmem:[#allocation5 + $0xe8] sm:$0xff] }
  0x7d   : > { %v366_v17 = vld [vmem:[#allocation5 + $0xf8] sm:$0xff]  ;;  %v2345_v18 = vpack.c.bf16 %v361_v15, %v359_v14  ;;  %v363_v20 = vld [vmem:[#allocation5 + $0xe0] sm:$0xff]  ;;  %v365_v21 = vld [vmem:[#allocation5 + $0xf0] sm:$0xff] }
  0x7e   : > { %467 = vmatmul.mubr.f32.vlgmr.msra.gmra.mrb[0].mxu1 %v3158_v32  ;;  %2378 = vmatpush1.bf16.msra.mxu0 %v2377_v45  ;;  %v2329_v32 = vpack.c.bf16 %v345_v52, %v343_v51  ;;  %v2347_v19 = vpack.c.bf16 %v366_v17, %v364_v16  ;;  %v770_v22 = vld [vmem:[#allocation7 + $0x208] sm:$0xff]  ;;  %v2349_v24 = vpack.c.bf16 %v365_v21, %v363_v20  ;;  %v769_v26 = vld [vmem:[#allocation7 + $0x200] sm:$0xff]  ;;  %v333_v30 = vld [vmem:[#allocation2] sm:$0xff] }
  0x7f   : > { %2322 = vmatpush1.bf16.msra.mxu1 %v2321_v34  ;;  %472 = vmatprep.mubr.f32.mxu1 %v2990_v0  ;;  %v774_v23 = vld [vmem:[#allocation7 + $0x228] sm:$0xff]  ;;  %v773_v27 = vld [vmem:[#allocation7 + $0x220] sm:$0xff]  ;;  %v334_v38 = vld [vmem:[#allocation2 + $0x8] sm:$0xff] }
  0x80   : > { %2324 = vmatprep.subr.bf16.mxu1 %v2323_v39  ;;  %2380 = vmatprep.subr.bf16.mxu0 %v2379_v47  ;;  %v2383_v25 = vpack.c.bf16 %v774_v23, %v770_v22  ;;  %v778_v28 = vld [vmem:[#allocation7 + $0x248] sm:$0xff]  ;;  %v777_v34 = vld [vmem:[#allocation7 + $0x240] sm:$0xff]  ;;  %v772_v10 = vld [vmem:[#allocation7 + $0x218] sm:$0xff] }
  0x81   : > { %v782_v29 = vld [vmem:[#allocation7 + $0x268] sm:$0xff]  ;;  %v781_v35 = vld [vmem:[#allocation7 + $0x260] sm:$0xff]  ;;  %v776_v11 = vld [vmem:[#allocation7 + $0x238] sm:$0xff] }
  0x82   : > { %473 = vmatmul.mubr.f32.gmra.mrb[2].mxu1 %v324_v31  ;;  %2382 = vmatpush1.bf16.msra.mxu0 %v2381_v55  ;;  %v2385_v31 = vpack.c.bf16 %v773_v27, %v769_v26  ;;  %v2387_v33 = vpack.c.bf16 %v782_v29, %v778_v28  ;;  %v786_v36 = vld [vmem:[#allocation7 + $0x288] sm:$0xff]  ;;  %v2389_v39 = vpack.c.bf16 %v781_v35, %v777_v34  ;;  %v785_v41 = vld [vmem:[#allocation7 + $0x280] sm:$0xff]  ;;  %v672_v20 = vld [vmem:[%s3376_s2] sm:$0x3] }
  0x83   : > { %2326 = vmatpush1.bf16.msra.mxu1 %v2325_v46  ;;  %543 = vmatprep.mubr.f32.mxu1 %v2990_v0  ;;  %v790_v37 = vld [vmem:[#allocation7 + $0x2a8] sm:$0xff]  ;;  %v789_v42 = vld [vmem:[#allocation7 + $0x2a0] sm:$0xff]  ;;  %v771_v23 = vld [vmem:[#allocation7 + $0x210] sm:$0xff] }
  0x84   : > { %2328 = vmatprep.subr.bf16.mxu1 %v2327_v50  ;;  %v2391_v40 = vpack.c.bf16 %v790_v37, %v786_v36  ;;  %v794_v43 = vld [vmem:[#allocation7 + $0x2c8] sm:$0xff]  ;;  %v2393_v45 = vpack.c.bf16 %v789_v42, %v785_v41  ;;  %v793_v47 = vld [vmem:[#allocation7 + $0x2c0] sm:$0xff]  ;;  %v780_v27 = vld [vmem:[#allocation7 + $0x258] sm:$0xff] }
  0x85   : > { %656 = vmatmul.mubr.f32.vlgmr.msra.gmra.mrb[0].mxu0 %v556_v61  ;;  %v798_v44 = vld [vmem:[#allocation7 + $0x2e8] sm:$0xff]  ;;  %v797_v48 = vld [vmem:[#allocation7 + $0x2e0] sm:$0xff]  ;;  %v784_v28 = vld [vmem:[#allocation7 + $0x278] sm:$0xff] }
  0x86   : > { %661 = vmatprep.mubr.f32.mxu0 %v2990_v0  ;;  %v2395_v46 = vpack.c.bf16 %v798_v44, %v794_v43  ;;  %v802_v49 = vld [vmem:[#allocation7 + $0x308] sm:$0xff]  ;;  %v2397_v51 = vpack.c.bf16 %v797_v48, %v793_v47  ;;  %v801_v53 = vld [vmem:[#allocation7 + $0x300] sm:$0xff]  ;;  %v2419_v35 = vpack.c.bf16 %v784_v28, %v780_v27  ;;  %v779_v36 = vld [vmem:[#allocation7 + $0x250] sm:$0xff] }
  0x87   : > { %2330 = vmatpush1.bf16.msra.mxu1 %v2329_v32  ;;  %v806_v50 = vld [vmem:[#allocation7 + $0x328] sm:$0xff]  ;;  %v805_v54 = vld [vmem:[#allocation7 + $0x320] sm:$0xff]  ;;  %v783_v37 = vld [vmem:[#allocation7 + $0x270] sm:$0xff] }
  0x88   : > { %2332 = vmatprep.subr.bf16.mxu1 %v2331_v56  ;;  %v2399_v52 = vpack.c.bf16 %v806_v50, %v802_v49  ;;  %v2401_v55 = vpack.c.bf16 %v805_v54, %v801_v53  ;;  %v810_v32 = vld [vmem:[#allocation7 + $0x348] sm:$0xff]  ;;  %v809_v58 = vld [vmem:[#allocation7 + $0x340] sm:$0xff]  ;;  %v792_v41 = vld [vmem:[#allocation7 + $0x2b8] sm:$0xff] }
  0x89   : > { %662 = vmatmul.mubr.f32.gmra.mrb[2].mxu0 %v557_v5  ;;  %v814_v56 = vld [vmem:[#allocation7 + $0x368] sm:$0xff]  ;;  %v813_v59 = vld [vmem:[#allocation7 + $0x360] sm:$0xff]  ;;  %v787_v48 = vld [vmem:[#allocation7 + $0x290] sm:$0xff] }
  0x8a   : > { %v2403_v57 = vpack.c.bf16 %v814_v56, %v810_v32  ;;  %v2405_v60 = vpack.c.bf16 %v813_v59, %v809_v58  ;;  %v818_v61 = vld [vmem:[#allocation7 + $0x388] sm:$0xff]  ;;  %v817_v1 = vld [vmem:[#allocation7 + $0x380] sm:$0xff]  ;;  %v791_v49 = vld [vmem:[#allocation7 + $0x2b0] sm:$0xff] }
  0x8b   : > { %2334 = vmatpush1.bf16.msra.mxu1 %v2333_v62  ;;  %v822_v62 = vld [vmem:[#allocation7 + $0x3a8] sm:$0xff]  ;;  %v821_v2 = vld [vmem:[#allocation7 + $0x3a0] sm:$0xff]  ;;  %v2425_v53 = vpack.c.bf16 %v791_v49, %v787_v48  ;;  %v799_v32 = vld [vmem:[#allocation7 + $0x2f0] sm:$0xff] }
  0x8c   : > { %2336 = vmatprep.subr.bf16.mxu1 %v2335_v63  ;;  %v2407_v63 = vpack.c.bf16 %v822_v62, %v818_v61  ;;  %v2409_v3 = vpack.c.bf16 %v821_v2, %v817_v1  ;;  %v826_v4 = vld [vmem:[#allocation7 + $0x3c8] sm:$0xff]  ;;  %v829_v8 = vld [vmem:[#allocation7 + $0x3e0] sm:$0xff]  ;;  %v804_v56 = vld [vmem:[#allocation7 + $0x318] sm:$0xff] }
  0x8d   : > { %v830_v5 = vld [vmem:[#allocation7 + $0x3e8] sm:$0xff]  ;;  %v807_v61 = vld [vmem:[#allocation7 + $0x330] sm:$0xff]  ;;  %v812_v62 = vld [vmem:[#allocation7 + $0x358] sm:$0xff] }
  0x8e   : > { %v715_v27 = vld [vmem:[#allocation7 + $0x68] sm:$0xff] }
  0x8f   : > { %2338 = vmatpush1.bf16.msra.mxu1 %v2337_v6  ;;  %v2411_v6 = vpack.c.bf16 %v830_v5, %v826_v4  ;;  %v815_v4 = vld [vmem:[#allocation7 + $0x370] sm:$0xff]  ;;  %v820_v5 = vld [vmem:[#allocation7 + $0x398] sm:$0xff]  ;;  %v735_v48 = vld [vmem:[#allocation7 + $0x108] sm:$0xff] }
  0x90   : > { %2340 = vmatprep.subr.bf16.mxu1 %v2339_v7  ;;  %v825_v7 = vld [vmem:[#allocation7 + $0x3c0] sm:$0xff]  ;;  %v739_v49 = vld [vmem:[#allocation7 + $0x128] sm:$0xff] }
  0x91   : > { %v2413_v9 = vpack.c.bf16 %v829_v8, %v825_v7 }
  0x93   : > { %2342 = vmatpush1.bf16.msra.mxu1 %v2341_v12  ;;  %v2415_v12 = vpack.c.bf16 %v776_v11, %v772_v10  ;;  %v823_v10 = vld [vmem:[#allocation7 + $0x3b0] sm:$0xff]  ;;  %v828_v11 = vld [vmem:[#allocation7 + $0x3d8] sm:$0xff] }
  0x94   : > { %2344 = vmatprep.subr.bf16.mxu1 %v2343_v13  ;;  %v674_v13 = vlaneseq }
  0x96   : > { %vm1508_vm0 = vcmp.lt.s32.totalorder %v674_v13, 256 }
  0x97   : > { %2346 = vmatpush1.bf16.msra.mxu1 %v2345_v18  ;;  %1510 = vst.msk [vmem:[#allocation4] ss:$8 sm:$0x3] %vm1508_vm0, %v2990_v0  ;;  %1551 = vst.msk [vmem:[#allocation4 + $0xb7] ss:$8 sm:$0x3] %vm1508_vm0, %v2990_v0 }
  0x98   : > { %2348 = vmatprep.subr.bf16.mxu1 %v2347_v19  ;;  %v3171_v18 = vshrl.u32 %v674_v13, 7 }
  0x9a   : > { %v3174_v19 = vsub.s32 0, %v3171_v18  ;;  %v3180_v21 = vsub.s32 1, %v3171_v18 }
  0x9b   : > { %2350 = vmatpush1.bf16.msra.mxu1 %v2349_v24  ;;  %v775_v24 = vld [vmem:[#allocation7 + $0x230] sm:$0xff] }
  0x9c   : > { %2384 = vmatprep.subr.bf16.mxu1 %v2383_v25  ;;  %v677_v22 = vrot.slane %v672_v20, %v3174_v19  ;;  %v681_v26 = vrot.slane %v672_v20, %v3180_v21  ;;  %v707_v20 = vld [vmem:[#allocation7 + $0x28] sm:$0xff] }
  0x9e   : > { %544 = vmatmul.mubr.f32.vlgmr.msra.gmra.mrb[0].mxu1 %v333_v30 }
  0x9f   : > { %549 = vmatprep.mubr.f32.mxu1 %v2990_v0  ;;  %2386 = vmatpush1.bf16.msra.mxu1 %v2385_v31 }
  0xa0   : > { %2388 = vmatprep.subr.bf16.mxu1 %v2387_v33  ;;  %v2417_v33 = vpack.c.bf16 %v775_v24, %v771_v23  ;;  %v702_v24 = vld [vmem:[#allocation7] sm:$0xff] }
  0xa2   : > { %550 = vmatmul.mubr.f32.gmra.mrb[2].mxu1 %v334_v38 }
  0xa3   : > { %2390 = vmatpush1.bf16.msra.mxu1 %v2389_v39  ;;  %897 = vmatprep.mubr.f32.mxu1 %v2990_v0 }
  0xa4   : > { %2392 = vmatprep.subr.bf16.mxu1 %v2391_v40  ;;  %v788_v40 = vld [vmem:[#allocation7 + $0x298] sm:$0xff] }
  0xa5   : > { %v2423_v47 = vpack.c.bf16 %v792_v41, %v788_v40  ;;  %v722_v40 = vld [vmem:[#allocation7 + $0xa0] sm:$0xff]  ;;  %v727_v41 = vld [vmem:[#allocation7 + $0xc8] sm:$0xff] }
  0xa7   : > { %2394 = vmatpush1.bf16.msra.mxu1 %v2393_v45  ;;  %v2421_v45 = vpack.c.bf16 %v783_v37, %v779_v36 }
  0xa8   : > { %2396 = vmatprep.subr.bf16.mxu1 %v2395_v46 }
  0xab   : > { %2398 = vmatpush1.bf16.msra.mxu1 %v2397_v51  ;;  %v796_v51 = vld [vmem:[#allocation7 + $0x2d8] sm:$0xff] }
  0xac   : > { %2400 = vmatprep.subr.bf16.mxu1 %v2399_v52  ;;  %v800_v52 = vld [vmem:[#allocation7 + $0x2f8] sm:$0xff] }
  0xad   : > { %v2427_v54 = vpack.c.bf16 %v800_v52, %v796_v51  ;;  %v2463_v52 = vpack.c.bf16 %v739_v49, %v735_v48  ;;  %v704_v49 = vld [vmem:[#allocation7 + $0x10] sm:$0xff] }
  0xaf   : > { %2402 = vmatpush1.bf16.msra.mxu1 %v2401_v55  ;;  %v795_v55 = vld [vmem:[#allocation7 + $0x2d0] sm:$0xff] }
  0xb0   : > { %2404 = vmatprep.subr.bf16.mxu1 %v2403_v57  ;;  %v808_v57 = vld [vmem:[#allocation7 + $0x338] sm:$0xff]  ;;  %v2429_v58 = vpack.c.bf16 %v799_v32, %v795_v55  ;;  %v743_v55 = vld [vmem:[#allocation7 + $0x148] sm:$0xff] }
  0xb1   : > { %v2431_v59 = vpack.c.bf16 %v808_v57, %v804_v56  ;;  %v747_v32 = vld [vmem:[#allocation7 + $0x168] sm:$0xff]  ;;  %v742_v56 = vld [vmem:[#allocation7 + $0x140] sm:$0xff] }
  0xb2   : > { %v746_v57 = vld [vmem:[#allocation7 + $0x160] sm:$0xff] }
  0xb3   : > { %2406 = vmatpush1.bf16.msra.mxu1 %v2405_v60  ;;  %v803_v60 = vld [vmem:[#allocation7 + $0x310] sm:$0xff] }
  0xb4   : > { %2408 = vmatprep.subr.bf16.mxu1 %v2407_v63  ;;  %v816_v63 = vld [vmem:[#allocation7 + $0x378] sm:$0xff]  ;;  %v2433_v1 = vpack.c.bf16 %v807_v61, %v803_v60  ;;  %v1638_v60 = vld [vmem:[#allocation9 + $0x200] sm:$0xff] }
  0xb5   : > { %v2435_v2 = vpack.c.bf16 %v816_v63, %v812_v62  ;;  %v1640_v63 = vld [vmem:[#allocation9 + $0x210] sm:$0xff] }
  0xb7   : > { %2410 = vmatpush1.bf16.msra.mxu1 %v2409_v3  ;;  %v811_v3 = vld [vmem:[#allocation7 + $0x350] sm:$0xff] }
  0xb8   : > { %2412 = vmatprep.subr.bf16.mxu1 %v2411_v6  ;;  %v824_v6 = vld [vmem:[#allocation7 + $0x3b8] sm:$0xff]  ;;  %v2437_v7 = vpack.c.bf16 %v815_v4, %v811_v3  ;;  %v2467_v3 = vpack.c.bf16 %v747_v32, %v743_v55  ;;  %v2577_v4 = vpack.c.bf16 %v1640_v63, %v1638_v60 }
  0xb9   : > { %v2439_v8 = vpack.c.bf16 %v824_v6, %v820_v5  ;;  %v1642_v6 = vld [vmem:[#allocation9 + $0x220] sm:$0xff]  ;;  %v1661_v55 = vld [vmem:[#allocation9 + $0x2b8] sm:$0xff] }
  0xba   : > { %v725_v63 = vld [vmem:[#allocation7 + $0xb8] sm:$0xff] }
  0xbb   : > { %2414 = vmatpush1.bf16.msra.mxu1 %v2413_v9  ;;  %v819_v9 = vld [vmem:[#allocation7 + $0x390] sm:$0xff] }
  0xbc   : > { %2416 = vmatprep.subr.bf16.mxu1 %v2415_v12  ;;  %v832_v12 = vld [vmem:[#allocation7 + $0x3f8] sm:$0xff]  ;;  %v2441_v13 = vpack.c.bf16 %v823_v10, %v819_v9  ;;  %v751_v9 = vld [vmem:[#allocation7 + $0x188] sm:$0xff] }
  0xbd   : > { %v755_v10 = vld [vmem:[#allocation7 + $0x1a8] sm:$0xff] }
 0x158   : > { %v657_v14 = vpop.f32.mrb[0].mxu0 }
 0x159   : > { %v659_v15 = vpop.f32.mrb[1].mxu0 }
 0x15c   : > { %v663_v16 = vpop.f32.mrb[2].mxu0 }
 0x15d   : > { %v665_v17 = vpop.f32.mrb[3].mxu0 }
 0x171   : > { %v545_v25 = vpop.f32.mrb[0].mxu1 }
 0x172   : > { %v2767_v29 = vadd.f32 %v657_v14, %v545_v25  ;;  %v547_v30 = vpop.f32.mrb[1].mxu1  ;;  %v2443_v14 = vpack.c.bf16 %v832_v12, %v828_v11  ;;  %v706_v25 = vld [vmem:[#allocation7 + $0x20] sm:$0xff]  ;;  %v1649_v11 = vld [vmem:[#allocation9 + $0x258] sm:$0xff] }
 0x173   : > { %v2768_v31 = vadd.f32 %v659_v15, %v547_v30  ;;  %v827_v15 = vld [vmem:[#allocation7 + $0x3d0] sm:$0xff]  ;;  %v2449_v28 = vpack.c.bf16 %v706_v25, %v702_v24  ;;  %v710_v30 = vld [vmem:[#allocation7 + $0x40] sm:$0xff]  ;;  %v1653_v24 = vld [vmem:[#allocation9 + $0x278] sm:$0xff] }
 0x174   : > { %v3184_v34 = vadd.f32 %v2767_v29, %v677_v22  ;;  %v759_v25 = vld [vmem:[#allocation7 + $0x1c8] sm:$0xff] }
 0x175   : > { %v3186_v38 = vadd.f32 %v2768_v31, %v681_v26  ;;  %v551_v39 = vpop.f32.mrb[2].mxu1  ;;  %v714_v31 = vld [vmem:[#allocation7 + $0x60] sm:$0xff] }
 0x176   : > { %695 = vst [vmem:[#allocation3 + $0x2f] sm:$0xfe] %v3184_v34  ;;  %v2769_v42 = vadd.f32 %v663_v16, %v551_v39  ;;  %v553_v43 = vpop.f32.mrb[3].mxu1  ;;  %898 = vmatmul.mubr.f32.vlgmr.msra.gmra.mrb[4].mxu1 %v3184_v34  ;;  %v831_v16 = vld [vmem:[#allocation7 + $0x3f0] sm:$0xff]  ;;  %v2453_v36 = vpack.c.bf16 %v714_v31, %v710_v30  ;;  %v718_v39 = vld [vmem:[#allocation7 + $0x80] sm:$0xff] }
 0x177   : > { %693 = vst [vmem:[#allocation3 + $0x1] sm:$0xff] %v3186_v38  ;;  %v2770_v44 = vadd.f32 %v665_v17, %v553_v43  ;;  %2418 = vmatpush1.bf16.msra.mxu1 %v2417_v33  ;;  %903 = vmatprep.mubr.f32.mxu1 %v2990_v0  ;;  %v703_v17 = vld [vmem:[#allocation7 + $0x8] sm:$0xff]  ;;  %v2457_v43 = vpack.c.bf16 %v722_v40, %v718_v39  ;;  %v1650_v31 = vld [vmem:[#allocation9 + $0x260] sm:$0xff]  ;;  %v1657_v39 = vld [vmem:[#allocation9 + $0x298] sm:$0xff] }
 0x178   : > { %v3192_v46 = vadd.f32 %v2769_v42, %v677_v22  ;;  %2420 = vmatprep.subr.bf16.mxu1 %v2419_v35  ;;  %v2445_v22 = vpack.c.bf16 %v831_v16, %v827_v15  ;;  %v2447_v23 = vpack.c.bf16 %v707_v20, %v703_v17  ;;  %v719_v33 = vld [vmem:[#allocation7 + $0x88] sm:$0xff]  ;;  %v1646_v16 = vld [vmem:[#allocation9 + $0x240] sm:$0xff]  ;;  %v1648_v17 = vld [vmem:[#allocation9 + $0x250] sm:$0xff]  ;;  %v2471_v20 = vpack.c.bf16 %v755_v10, %v751_v9 }
 0x179   : > { %v3194_v50 = vadd.f32 %v2770_v44, %v681_v26  ;;  %v711_v26 = vld [vmem:[#allocation7 + $0x48] sm:$0xff]  ;;  %v705_v40 = vld [vmem:[#allocation7 + $0x18] sm:$0xff]  ;;  %v1664_v9 = vld [vmem:[#allocation9 + $0x2d0] sm:$0xff] }
 0x17a   : > { %696 = vst [vmem:[#allocation3 + $0x37] sm:$0xff] %v3192_v46  ;;  %904 = vmatmul.mubr.f32.gmra.mrb[6].mxu1 %v3192_v46  ;;  %v2451_v29 = vpack.c.bf16 %v715_v27, %v711_v26  ;;  %v723_v35 = vld [vmem:[#allocation7 + $0xa8] sm:$0xff]  ;;  %v2585_v27 = vpack.c.bf16 %v1648_v17, %v1646_v16  ;;  %v1669_v17 = vld [vmem:[#allocation9 + $0x2f8] sm:$0xff] }
 0x17b   : > { %694 = vst [vmem:[#allocation3 + $0x9] sm:$0x7f] %v3194_v50  ;;  %2422 = vmatpush1.bf16.msra.mxu1 %v2421_v45  ;;  %909 = vmatprep.mubr.f32.mxu1 %v2990_v0  ;;  %v2455_v37 = vpack.c.bf16 %v723_v35, %v719_v33  ;;  %v731_v42 = vld [vmem:[#allocation7 + $0xe8] sm:$0xff]  ;;  %v726_v45 = vld [vmem:[#allocation7 + $0xc0] sm:$0xff]  ;;  %v1652_v33 = vld [vmem:[#allocation9 + $0x270] sm:$0xff] }
 0x17c   : > { %2424 = vmatprep.subr.bf16.mxu1 %v2423_v47  ;;  %v2459_v44 = vpack.c.bf16 %v731_v42, %v727_v41  ;;  %v730_v47 = vld [vmem:[#allocation7 + $0xe0] sm:$0xff]  ;;  %v763_v26 = vld [vmem:[#allocation7 + $0x1e8] sm:$0xff]  ;;  %v709_v41 = vld [vmem:[#allocation7 + $0x38] sm:$0xff]  ;;  %v2589_v42 = vpack.c.bf16 %v1652_v33, %v1650_v31 }
 0x17d   : > { %v2461_v51 = vpack.c.bf16 %v730_v47, %v726_v45  ;;  %v2475_v35 = vpack.c.bf16 %v763_v26, %v759_v25  ;;  %v1654_v45 = vld [vmem:[#allocation9 + $0x280] sm:$0xff]  ;;  %v1656_v47 = vld [vmem:[#allocation9 + $0x290] sm:$0xff]  ;;  %v2479_v48 = vpack.c.bf16 %v709_v41, %v705_v40  ;;  %v1667_v16 = vld [vmem:[#allocation9 + $0x2e8] sm:$0xff] }
 0x17e   : > { %910 = vmatmul.mubr.f32.gmra.mrb[8].mxu1 %v3186_v38  ;;  %v2593_v32 = vpack.c.bf16 %v1656_v47, %v1654_v45  ;;  %v728_v26 = vld [vmem:[#allocation7 + $0xd0] sm:$0xff]  ;;  %v1671_v31 = vld [vmem:[#allocation9 + $0x308] sm:$0xff]  ;;  %v1673_v33 = vld [vmem:[#allocation9 + $0x318] sm:$0xff] }
 0x17f   : > { %2426 = vmatpush1.bf16.msra.mxu1 %v2425_v53  ;;  %915 = vmatprep.mubr.f32.mxu1 %v2990_v0  ;;  %v734_v53 = vld [vmem:[#allocation7 + $0x100] sm:$0xff]  ;;  %v1672_v40 = vld [vmem:[#allocation9 + $0x310] sm:$0xff]  ;;  %v1677_v45 = vld [vmem:[#allocation9 + $0x338] sm:$0xff] }
 0x180   : > { %2428 = vmatprep.subr.bf16.mxu1 %v2427_v54  ;;  %v738_v54 = vld [vmem:[#allocation7 + $0x120] sm:$0xff]  ;;  %v745_v47 = vld [vmem:[#allocation7 + $0x158] sm:$0xff] }
 0x181   : > { %v2465_v61 = vpack.c.bf16 %v738_v54, %v734_v53  ;;  %v717_v53 = vld [vmem:[#allocation7 + $0x78] sm:$0xff]  ;;  %v1659_v54 = vld [vmem:[#allocation9 + $0x2a8] sm:$0xff] }
 0x182   : > { %916 = vmatmul.mubr.f32.gmra.mrb[10].mxu1 %v3194_v50 }
 0x183   : > { %2430 = vmatpush1.bf16.msra.mxu1 %v2429_v58  ;;  %986 = vmatprep.mubr.f32.mxu1 %v2990_v0  ;;  %v1639_v58 = vld [vmem:[#allocation9 + $0x208] sm:$0xff] }
 0x184   : > { %2432 = vmatprep.subr.bf16.mxu1 %v2431_v59  ;;  %v1641_v59 = vld [vmem:[#allocation9 + $0x218] sm:$0xff] }
 0x185   : > { %v2575_v62 = vpack.c.bf16 %v1641_v59, %v1639_v58  ;;  %v1658_v58 = vld [vmem:[#allocation9 + $0x2a0] sm:$0xff]  ;;  %v1660_v59 = vld [vmem:[#allocation9 + $0x2b0] sm:$0xff] }
 0x187   : > { %2434 = vmatpush1.bf16.msra.mxu1 %v2433_v1  ;;  %v1643_v1 = vld [vmem:[#allocation9 + $0x228] sm:$0xff]  ;;  %2576 = vmatprep.subr.bf16.mxu0 %v2575_v62  ;;  %v721_v62 = vld [vmem:[#allocation7 + $0x98] sm:$0xff] }
 0x188   : > { %2436 = vmatprep.subr.bf16.mxu1 %v2435_v2  ;;  %v1645_v2 = vld [vmem:[#allocation9 + $0x238] sm:$0xff]  ;;  %2578 = vmatpush1.bf16.msra.mxu0 %v2577_v4  ;;  %v2487_v10 = vpack.c.bf16 %v725_v63, %v721_v62  ;;  %v752_v63 = vld [vmem:[#allocation7 + $0x190] sm:$0xff] }
 0x189   : > { %v2579_v5 = vpack.c.bf16 %v1645_v2, %v1643_v1  ;;  %v2595_v1 = vpack.c.bf16 %v1661_v55, %v1659_v54  ;;  %v3212_v2 = vld [vmem:[#allocation3] sm:$0xff]  ;;  %v1665_v4 = vld [vmem:[#allocation9 + $0x2d8] sm:$0xff]  ;;  %v1676_v55 = vld [vmem:[#allocation9 + $0x330] sm:$0xff] }
 0x18a   : > { %v1674_v54 = vld [vmem:[#allocation9 + $0x320] sm:$0xff] }
 0x18b   : > { %2438 = vmatpush1.bf16.msra.mxu1 %v2437_v7  ;;  %v1644_v7 = vld [vmem:[#allocation9 + $0x230] sm:$0xff]  ;;  %2580 = vmatprep.subr.bf16.mxu0 %v2579_v5  ;;  %v2597_v5 = vpack.c.bf16 %v1660_v59, %v1658_v58  ;;  %v1681_v58 = vld [vmem:[#allocation9 + $0x358] sm:$0xff] }
 0x18c   : > { %2440 = vmatprep.subr.bf16.mxu1 %v2439_v8  ;;  %v1647_v8 = vld [vmem:[#allocation9 + $0x248] sm:$0xff]  ;;  %v2581_v12 = vpack.c.bf16 %v1644_v7, %v1642_v6  ;;  %v720_v7 = vld [vmem:[#allocation7 + $0x90] sm:$0xff]  ;;  %v753_v59 = vld [vmem:[#allocation7 + $0x198] sm:$0xff] }
 0x18d   : > { %v2583_v15 = vpack.c.bf16 %v1649_v11, %v1647_v8  ;;  %v1662_v8 = vld [vmem:[#allocation9 + $0x2c0] sm:$0xff]  ;;  %v724_v11 = vld [vmem:[#allocation7 + $0xb0] sm:$0xff] }
 0x18e   : > { %2582 = vmatpush1.bf16.msra.mxu0 %v2581_v12  ;;  %v729_v12 = vld [vmem:[#allocation7 + $0xd8] sm:$0xff] }
 0x18f   : > { %2442 = vmatpush1.bf16.msra.mxu1 %v2441_v13  ;;  %v2469_v13 = vpack.c.bf16 %v746_v57, %v742_v56  ;;  %2584 = vmatprep.subr.bf16.mxu0 %v2583_v15  ;;  %v712_v57 = vld [vmem:[#allocation7 + $0x50] sm:$0xff]  ;;  %v3216_v15 = vld [vmem:[#allocation3 + $0x8] sm:$0xff] }
 0x190   : > { %2444 = vmatprep.subr.bf16.mxu1 %v2443_v14  ;;  %v750_v14 = vld [vmem:[#allocation7 + $0x180] sm:$0xff] }
 0x192   : > { %2586 = vmatpush1.bf16.msra.mxu0 %v2585_v27  ;;  %v732_v27 = vld [vmem:[#allocation7 + $0xf0] sm:$0xff] }
 0x193   : > { %2446 = vmatpush1.bf16.msra.mxu1 %v2445_v22  ;;  %v754_v22 = vld [vmem:[#allocation7 + $0x1a0] sm:$0xff] }
 0x194   : > { %2448 = vmatprep.subr.bf16.mxu1 %v2447_v23  ;;  %v1651_v23 = vld [vmem:[#allocation9 + $0x268] sm:$0xff] }
 0x195   : > { %v2587_v30 = vpack.c.bf16 %v1653_v24, %v1651_v23  ;;  %v1666_v23 = vld [vmem:[#allocation9 + $0x2e0] sm:$0xff]  ;;  %v1668_v24 = vld [vmem:[#allocation9 + $0x2f0] sm:$0xff] }
 0x196   : > { %987 = vmatmul.mubr.f32.vlgmr.msra.gmra.mrb[12].mxu1 %v3184_v34 }
 0x197   : > { %2450 = vmatpush1.bf16.msra.mxu1 %v2449_v28  ;;  %992 = vmatprep.mubr.f32.mxu1 %v2990_v0  ;;  %v2473_v28 = vpack.c.bf16 %v754_v22, %v750_v14  ;;  %v2489_v22 = vpack.c.bf16 %v724_v11, %v720_v7  ;;  %v1683_v7 = vld [vmem:[#allocation9 + $0x368] sm:$0xff] }
 0x198   : > { %2452 = vmatprep.subr.bf16.mxu1 %v2451_v29  ;;  %v758_v29 = vld [vmem:[#allocation7 + $0x1c0] sm:$0xff]  ;;  %2588 = vmatprep.subr.bf16.mxu0 %v2587_v30  ;;  %v741_v30 = vld [vmem:[#allocation7 + $0x138] sm:$0xff] }
 0x199   : > { %2590 = vmatpush1.bf16.msra.mxu0 %v2589_v42  ;;  %v740_v42 = vld [vmem:[#allocation7 + $0x130] sm:$0xff] }
 0x19a   : > { %993 = vmatmul.mubr.f32.gmra.mrb[14].mxu1 %v3192_v46 }
 0x19b   : > { %2454 = vmatpush1.bf16.msra.mxu1 %v2453_v36  ;;  %998 = vmatprep.mubr.f32.mxu1 %v2990_v0  ;;  %v762_v36 = vld [vmem:[#allocation7 + $0x1e0] sm:$0xff] }
 0x19c   : > { %2456 = vmatprep.subr.bf16.mxu1 %v2455_v37  ;;  %v1655_v37 = vld [vmem:[#allocation9 + $0x288] sm:$0xff] }
 0x19e   : > { %999 = vmatmul.mubr.f32.gmra.mrb[16].mxu1 %v3186_v38 }
 0x19f   : > { %2458 = vmatpush1.bf16.msra.mxu1 %v2457_v43  ;;  %1004 = vmatprep.mubr.f32.mxu1 %v2990_v0  ;;  %v2477_v43 = vpack.c.bf16 %v762_v36, %v758_v29  ;;  %v2603_v29 = vpack.c.bf16 %v1669_v17, %v1667_v16  ;;  %v2493_v36 = vpack.c.bf16 %v732_v27, %v728_v26  ;;  %v1682_v16 = vld [vmem:[#allocation9 + $0x360] sm:$0xff]  ;;  %v1684_v17 = vld [vmem:[#allocation9 + $0x370] sm:$0xff]  ;;  %v1199_v26 = vld [vmem:[#allocation7 + $0x428] sm:$0xff] }
 0x1a0   : > { %2460 = vmatprep.subr.bf16.mxu1 %v2459_v44  ;;  %v2591_v44 = vpack.c.bf16 %v1657_v39, %v1655_v37  ;;  %v736_v37 = vld [vmem:[#allocation7 + $0x110] sm:$0xff]  ;;  %v1670_v39 = vld [vmem:[#allocation9 + $0x300] sm:$0xff]  ;;  %v2621_v27 = vpack.c.bf16 %v1684_v17, %v1682_v16  ;;  %v1197_v17 = vld [vmem:[#allocation7 + $0x418] sm:$0xff] }
 0x1a1   : > { %v1254_v16 = vld [vmem:[#allocation7 + $0x5e0] sm:$0xff] }
 0x1a2   : > { %1005 = vmatmul.mubr.f32.gmra.mrb[18].mxu1 %v3194_v50  ;;  %2592 = vmatprep.subr.bf16.mxu0 %v2591_v44  ;;  %v1675_v44 = vld [vmem:[#allocation9 + $0x328] sm:$0xff] }
 0x1a3   : > { %2462 = vmatpush1.bf16.msra.mxu1 %v2461_v51  ;;  %1075 = vmatprep.mubr.f32.mxu1 %v2990_v0  ;;  %v708_v51 = vld [vmem:[#allocation7 + $0x30] sm:$0xff] }
 0x1a4   : > { %2464 = vmatprep.subr.bf16.mxu1 %v2463_v52  ;;  %v713_v52 = vld [vmem:[#allocation7 + $0x58] sm:$0xff]  ;;  %v2481_v56 = vpack.c.bf16 %v708_v51, %v704_v49  ;;  %2594 = vmatpush1.bf16.msra.mxu0 %v2593_v32  ;;  %v2609_v49 = vpack.c.bf16 %v1672_v40, %v1670_v39  ;;  %v2497_v51 = vpack.c.bf16 %v740_v42, %v736_v37  ;;  %v1203_v37 = vld [vmem:[#allocation7 + $0x448] sm:$0xff] }
 0x1a5   : > { %v2483_v60 = vpack.c.bf16 %v717_v53, %v713_v52  ;;  %2596 = vmatprep.subr.bf16.mxu0 %v2595_v1  ;;  %v744_v52 = vld [vmem:[#allocation7 + $0x150] sm:$0xff]  ;;  %v2611_v53 = vpack.c.bf16 %v1677_v45, %v1675_v44  ;;  %v1207_v39 = vld [vmem:[#allocation7 + $0x468] sm:$0xff]  ;;  %v1206_v44 = vld [vmem:[#allocation7 + $0x460] sm:$0xff] }
 0x1a6   : > { %v2515_v42 = vpack.c.bf16 %v1207_v39, %v1203_v37  ;;  %v1211_v45 = vld [vmem:[#allocation7 + $0x488] sm:$0xff]  ;;  %v1212_v39 = vld [vmem:[#allocation7 + $0x490] sm:$0xff] }
 0x1a7   : > { %2466 = vmatpush1.bf16.msra.mxu1 %v2465_v61  ;;  %v716_v61 = vld [vmem:[#allocation7 + $0x70] sm:$0xff] }
 0x1a8   : > { %2468 = vmatprep.subr.bf16.mxu1 %v2467_v3  ;;  %v1663_v3 = vld [vmem:[#allocation9 + $0x2c8] sm:$0xff]  ;;  %v2485_v6 = vpack.c.bf16 %v716_v61, %v712_v57  ;;  %2598 = vmatpush1.bf16.msra.mxu0 %v2597_v5  ;;  %v2613_v61 = vpack.c.bf16 %v1676_v55, %v1674_v54 }
 0x1a9   : > { %v2599_v14 = vpack.c.bf16 %v1665_v4, %v1663_v3  ;;  %v1679_v57 = vld [vmem:[#allocation9 + $0x348] sm:$0xff]  ;;  %v1678_v3 = vld [vmem:[#allocation9 + $0x340] sm:$0xff]  ;;  %v1680_v4 = vld [vmem:[#allocation9 + $0x350] sm:$0xff] }
 0x1aa   : > { %v2615_v1 = vpack.c.bf16 %v1681_v58, %v1679_v57  ;;  %v2617_v11 = vpack.c.bf16 %v1680_v4, %v1678_v3  ;;  %v1223_v54 = vld [vmem:[#allocation7 + $0x4e8] sm:$0xff]  ;;  %v1234_v4 = vld [vmem:[#allocation7 + $0x540] sm:$0xff] }
 0x1ab   : > { %2470 = vmatpush1.bf16.msra.mxu1 %v2469_v13  ;;  %v733_v13 = vld [vmem:[#allocation7 + $0xf8] sm:$0xff]  ;;  %2600 = vmatprep.subr.bf16.mxu0 %v2599_v14  ;;  %v1227_v57 = vld [vmem:[#allocation7 + $0x508] sm:$0xff] }
 0x1ac   : > { %2472 = vmatprep.subr.bf16.mxu1 %v2471_v20  ;;  %v2601_v20 = vpack.c.bf16 %v1664_v9, %v1662_v8  ;;  %v2491_v25 = vpack.c.bf16 %v733_v13, %v729_v12  ;;  %v1685_v8 = vld [vmem:[#allocation9 + $0x378] sm:$0xff]  ;;  %v760_v13 = vld [vmem:[#allocation7 + $0x1d0] sm:$0xff]  ;;  %v1231_v58 = vld [vmem:[#allocation7 + $0x528] sm:$0xff] }
 0x1ad   : > { %v761_v9 = vld [vmem:[#allocation7 + $0x1d8] sm:$0xff]  ;;  %v2619_v14 = vpack.c.bf16 %v1685_v8, %v1683_v7 }
 0x1ae   : > { %2602 = vmatpush1.bf16.msra.mxu0 %v2601_v20 }
 0x1af   : > { %2474 = vmatpush1.bf16.msra.mxu1 %v2473_v28  ;;  %v737_v28 = vld [vmem:[#allocation7 + $0x118] sm:$0xff]  ;;  %2604 = vmatprep.subr.bf16.mxu0 %v2603_v29 }
 0x1b0   : > { %2476 = vmatprep.subr.bf16.mxu1 %v2475_v35  ;;  %v2605_v35 = vpack.c.bf16 %v1668_v24, %v1666_v23  ;;  %v2495_v41 = vpack.c.bf16 %v741_v30, %v737_v28  ;;  %v1687_v23 = vld [vmem:[#allocation9 + $0x388] sm:$0xff]  ;;  %v1689_v24 = vld [vmem:[#allocation9 + $0x398] sm:$0xff]  ;;  %v1686_v30 = vld [vmem:[#allocation9 + $0x380] sm:$0xff] }
 0x1b1   : > { %v2623_v29 = vpack.c.bf16 %v1689_v24, %v1687_v23  ;;  %v1196_v24 = vld [vmem:[#allocation7 + $0x410] sm:$0xff] }
 0x1b2   : > { %2606 = vmatpush1.bf16.msra.mxu0 %v2605_v35  ;;  %v1194_v35 = vld [vmem:[#allocation7 + $0x400] sm:$0xff] }
 0x1b3   : > { %2478 = vmatpush1.bf16.msra.mxu1 %v2477_v43  ;;  %v2607_v43 = vpack.c.bf16 %v1673_v33, %v1671_v31  ;;  %v1688_v31 = vld [vmem:[#allocation9 + $0x390] sm:$0xff] }
 0x1b4   : > { %2480 = vmatprep.subr.bf16.mxu1 %v2479_v48  ;;  %v749_v48 = vld [vmem:[#allocation7 + $0x178] sm:$0xff]  ;;  %v2625_v40 = vpack.c.bf16 %v1688_v31, %v1686_v30  ;;  %v1204_v30 = vld [vmem:[#allocation7 + $0x450] sm:$0xff] }
 0x1b5   : > { %v2499_v32 = vpack.c.bf16 %v749_v48, %v745_v47  ;;  %2608 = vmatprep.subr.bf16.mxu0 %v2607_v43  ;;  %v1202_v43 = vld [vmem:[#allocation7 + $0x440] sm:$0xff]  ;;  %v1215_v47 = vld [vmem:[#allocation7 + $0x4a8] sm:$0xff]  ;;  %v1208_v31 = vld [vmem:[#allocation7 + $0x470] sm:$0xff] }
 0x1b6   : > { %1076 = vmatmul.mubr.f32.vlgmr.msra.gmra.mrb[4].mxu1 %v3212_v2  ;;  %2610 = vmatpush1.bf16.msra.mxu0 %v2609_v49  ;;  %v2517_v48 = vpack.c.bf16 %v1206_v44, %v1202_v43  ;;  %v2519_v49 = vpack.c.bf16 %v1215_v47, %v1211_v45  ;;  %v1220_v45 = vld [vmem:[#allocation7 + $0x4d0] sm:$0xff] }
 0x1b7   : > { %2482 = vmatpush1.bf16.msra.mxu1 %v2481_v56  ;;  %1081 = vmatprep.mubr.f32.mxu1 %v2990_v0  ;;  %v748_v56 = vld [vmem:[#allocation7 + $0x170] sm:$0xff] }
 0x1b8   : > { %2484 = vmatprep.subr.bf16.mxu1 %v2483_v60  ;;  %v757_v60 = vld [vmem:[#allocation7 + $0x1b8] sm:$0xff]  ;;  %v2501_v62 = vpack.c.bf16 %v748_v56, %v744_v52  ;;  %2612 = vmatprep.subr.bf16.mxu0 %v2611_v53  ;;  %v1214_v52 = vld [vmem:[#allocation7 + $0x4a0] sm:$0xff]  ;;  %v1219_v53 = vld [vmem:[#allocation7 + $0x4c8] sm:$0xff] }
 0x1b9   : > { %v2503_v5 = vpack.c.bf16 %v757_v60, %v753_v59  ;;  %v1222_v56 = vld [vmem:[#allocation7 + $0x4e0] sm:$0xff]  ;;  %v2527_v60 = vpack.c.bf16 %v1231_v58, %v1227_v57  ;;  %v1224_v47 = vld [vmem:[#allocation7 + $0x4f0] sm:$0xff] }
 0x1ba   : > { %1082 = vmatmul.mubr.f32.gmra.mrb[6].mxu1 %v3216_v15  ;;  %2614 = vmatpush1.bf16.msra.mxu0 %v2613_v61  ;;  %v1226_v61 = vld [vmem:[#allocation7 + $0x500] sm:$0xff] }
 0x1bb   : > { %2486 = vmatpush1.bf16.msra.mxu1 %v2485_v6  ;;  %1087 = vmatprep.mubr.f32.mxu1 %v2990_v0  ;;  %v756_v6 = vld [vmem:[#allocation7 + $0x1b0] sm:$0xff] }
 0x1bc   : > { %2488 = vmatprep.subr.bf16.mxu1 %v2487_v10  ;;  %v765_v10 = vld [vmem:[#allocation7 + $0x1f8] sm:$0xff]  ;;  %v2505_v12 = vpack.c.bf16 %v756_v6, %v752_v63  ;;  %2616 = vmatprep.subr.bf16.mxu0 %v2615_v1  ;;  %v1239_v63 = vld [vmem:[#allocation7 + $0x568] sm:$0xff] }
 0x1bd   : > { %v2507_v20 = vpack.c.bf16 %v765_v10, %v761_v9  ;;  %v1247_v6 = vld [vmem:[#allocation7 + $0x5a8] sm:$0xff]  ;;  %v1242_v9 = vld [vmem:[#allocation7 + $0x580] sm:$0xff] }
 0x1be   : > { %1088 = vmatmul.mubr.f32.gmra.mrb[8].mxu1 %v3184_v34  ;;  %2618 = vmatpush1.bf16.msra.mxu0 %v2617_v11  ;;  %v1246_v10 = vld [vmem:[#allocation7 + $0x5a0] sm:$0xff]  ;;  %v1251_v11 = vld [vmem:[#allocation7 + $0x5c8] sm:$0xff] }
 0x1bf   : > { %2490 = vmatpush1.bf16.msra.mxu1 %v2489_v22  ;;  %1093 = vmatprep.mubr.f32.mxu1 %v2990_v0  ;;  %v764_v22 = vld [vmem:[#allocation7 + $0x1f0] sm:$0xff] }
 0x1c0   : > { %2492 = vmatprep.subr.bf16.mxu1 %v2491_v25  ;;  %v1195_v25 = vld [vmem:[#allocation7 + $0x408] sm:$0xff]  ;;  %v2509_v28 = vpack.c.bf16 %v764_v22, %v760_v13  ;;  %2620 = vmatprep.subr.bf16.mxu0 %v2619_v14  ;;  %v1250_v14 = vld [vmem:[#allocation7 + $0x5c0] sm:$0xff] }
 0x1c1   : > { %v2511_v33 = vpack.c.bf16 %v1199_v26, %v1195_v25  ;;  %v2541_v22 = vpack.c.bf16 %v1254_v16, %v1250_v14  ;;  %v1200_v25 = vld [vmem:[#allocation7 + $0x430] sm:$0xff]  ;;  %v1205_v26 = vld [vmem:[#allocation7 + $0x458] sm:$0xff]  ;;  %v1695_v16 = vld [vmem:[#allocation9 + $0x3c8] sm:$0xff] }
 0x1c2   : > { %1094 = vmatmul.mubr.f32.gmra.mrb[10].mxu1 %v3192_v46  ;;  %2622 = vmatpush1.bf16.msra.mxu0 %v2621_v27  ;;  %v1209_v27 = vld [vmem:[#allocation7 + $0x478] sm:$0xff] }
 0x1c3   : > { %2494 = vmatpush1.bf16.msra.mxu1 %v2493_v36  ;;  %1164 = vmatprep.mubr.f32.mxu1 %v2990_v0  ;;  %v1198_v36 = vld [vmem:[#allocation7 + $0x420] sm:$0xff] }
 0x1c4   : > { %2496 = vmatprep.subr.bf16.mxu1 %v2495_v41  ;;  %v2513_v41 = vpack.c.bf16 %v1198_v36, %v1194_v35  ;;  %2624 = vmatprep.subr.bf16.mxu0 %v2623_v29  ;;  %v2547_v29 = vpack.c.bf16 %v1209_v27, %v1205_v26  ;;  %v1217_v35 = vld [vmem:[#allocation7 + $0x4b8] sm:$0xff]  ;;  %v2549_v36 = vpack.c.bf16 %v1208_v31, %v1204_v30  ;;  %v1700_v26 = vld [vmem:[#allocation9 + $0x3f0] sm:$0xff] }
 0x1c5   : > { %v3246_v31 = vld [vmem:[%s3378_s4] sm:$0xf] }
 0x1c6   : > { %2626 = vmatpush1.bf16.msra.mxu0 %v2625_v40  ;;  %v1216_v40 = vld [vmem:[#allocation7 + $0x4b0] sm:$0xff] }
 0x1c7   : > { %2498 = vmatpush1.bf16.msra.mxu1 %v2497_v51  ;;  %v1210_v51 = vld [vmem:[#allocation7 + $0x480] sm:$0xff]  ;;  %v2553_v43 = vpack.c.bf16 %v1216_v40, %v1212_v39  ;;  %v1574_v40 = vld [vmem:[#allocation9 + $0x28] sm:$0xff] }
 0x1c8   : > { %2500 = vmatprep.subr.bf16.mxu1 %v2499_v32  ;;  %v2521_v55 = vpack.c.bf16 %v1214_v52, %v1210_v51  ;;  %v2523_v32 = vpack.c.bf16 %v1223_v54, %v1219_v53  ;;  %v1233_v51 = vld [vmem:[#allocation7 + $0x538] sm:$0xff]  ;;  %v2557_v52 = vpack.c.bf16 %v1224_v47, %v1220_v45  ;;  %v1228_v54 = vld [vmem:[#allocation7 + $0x510] sm:$0xff] }
 0x1cb   : > { %2502 = vmatpush1.bf16.msra.mxu1 %v2501_v62  ;;  %v1235_v62 = vld [vmem:[#allocation7 + $0x548] sm:$0xff] }
 0x1cc   : > { %2504 = vmatprep.subr.bf16.mxu1 %v2503_v5  ;;  %v2531_v3 = vpack.c.bf16 %v1239_v63, %v1235_v62  ;;  %v1243_v5 = vld [vmem:[#allocation7 + $0x588] sm:$0xff] }
 0x1cd   : > { %v2535_v8 = vpack.c.bf16 %v1247_v6, %v1243_v5 }
 0x1cf   : > { %2506 = vmatpush1.bf16.msra.mxu1 %v2505_v12  ;;  %v1255_v12 = vld [vmem:[#allocation7 + $0x5e8] sm:$0xff] }
 0x1d0   : > { %2508 = vmatprep.subr.bf16.mxu1 %v2507_v20  ;;  %v2539_v13 = vpack.c.bf16 %v1255_v12, %v1251_v11  ;;  %v1201_v20 = vld [vmem:[#allocation7 + $0x438] sm:$0xff] }
 0x1d1   : > { %v2543_v23 = vpack.c.bf16 %v1201_v20, %v1197_v17  ;;  %v1693_v11 = vld [vmem:[#allocation9 + $0x3b8] sm:$0xff]  ;;  %v1694_v20 = vld [vmem:[#allocation9 + $0x3c0] sm:$0xff] }
 0x1d3   : > { %2510 = vmatpush1.bf16.msra.mxu1 %v2509_v28  ;;  %v2545_v28 = vpack.c.bf16 %v1200_v25, %v1196_v24  ;;  %v1701_v24 = vld [vmem:[#allocation9 + $0x3f8] sm:$0xff]  ;;  %v1698_v25 = vld [vmem:[#allocation9 + $0x3e0] sm:$0xff] }
 0x1d4   : > { %2512 = vmatprep.subr.bf16.mxu1 %v2511_v33  ;;  %v1213_v33 = vld [vmem:[#allocation7 + $0x498] sm:$0xff]  ;;  %v2637_v27 = vpack.c.bf16 %v1700_v26, %v1698_v25  ;;  %v1589_v25 = vld [vmem:[#allocation9 + $0xa0] sm:$0xff]  ;;  %v1591_v26 = vld [vmem:[#allocation9 + $0xb0] sm:$0xff] }
 0x1d5   : > { %v2551_v37 = vpack.c.bf16 %v1217_v35, %v1213_v33  ;;  %v1457_v33 = vrot.slane %v3246_v31, %v3174_v19  ;;  %v1461_v35 = vrot.slane %v3246_v31, %v3180_v21 }
 0x1d6   : > { %1165 = vmatmul.mubr.f32.vlgmr.msra.gmra.mrb[12].mxu1 %v3212_v2  ;;  %v1218_v2 = vld [vmem:[#allocation7 + $0x4c0] sm:$0xff] }
 0x1d7   : > { %2514 = vmatpush1.bf16.msra.mxu1 %v2513_v41  ;;  %1170 = vmatprep.mubr.f32.mxu1 %v2990_v0  ;;  %v2525_v59 = vpack.c.bf16 %v1222_v56, %v1218_v2  ;;  %v1221_v41 = vld [vmem:[#allocation7 + $0x4d8] sm:$0xff] }
 0x1d8   : > { %2516 = vmatprep.subr.bf16.mxu1 %v2515_v42  ;;  %v1225_v42 = vld [vmem:[#allocation7 + $0x4f8] sm:$0xff] }
 0x1d9   : > { %v2555_v44 = vpack.c.bf16 %v1225_v42, %v1221_v41  ;;  %v1237_v2 = vld [vmem:[#allocation7 + $0x558] sm:$0xff] }
 0x1da   : > { %1171 = vmatmul.mubr.f32.gmra.mrb[14].mxu1 %v3216_v15  ;;  %v1230_v15 = vld [vmem:[#allocation7 + $0x520] sm:$0xff]  ;;  %v1241_v56 = vld [vmem:[#allocation7 + $0x578] sm:$0xff] }
 0x1db   : > { %2518 = vmatpush1.bf16.msra.mxu1 %v2517_v48  ;;  %1176 = vmatprep.mubr.f32.mxu1 %v2990_v0  ;;  %v2529_v1 = vpack.c.bf16 %v1230_v15, %v1226_v61  ;;  %v1191_v48 = vld [vmem:[#allocation3 + $0x30] sm:$0xff]  ;;  %v2563_v58 = vpack.c.bf16 %v1241_v56, %v1237_v2  ;;  %v1245_v61 = vld [vmem:[#allocation7 + $0x598] sm:$0xff] }
 0x1dc   : > { %2520 = vmatprep.subr.bf16.mxu1 %v2519_v49  ;;  %v1229_v49 = vld [vmem:[#allocation7 + $0x518] sm:$0xff] }
 0x1dd   : > { %v2559_v53 = vpack.c.bf16 %v1233_v51, %v1229_v49  ;;  %v1249_v15 = vld [vmem:[#allocation7 + $0x5b8] sm:$0xff]  ;;  %v1575_v49 = vld [vmem:[#allocation9 + $0x30] sm:$0xff] }
 0x1de   : > { %1177 = vmatmul.mubr.f32.gmra.mrb[16].mxu1 %v3184_v34  ;;  %v1238_v34 = vld [vmem:[#allocation7 + $0x560] sm:$0xff]  ;;  %v2567_v63 = vpack.c.bf16 %v1249_v15, %v1245_v61  ;;  %v1576_v41 = vld [vmem:[#allocation9 + $0x38] sm:$0xff] }
 0x1df   : > { %2522 = vmatpush1.bf16.msra.mxu1 %v2521_v55  ;;  %1182 = vmatprep.mubr.f32.mxu1 %v2990_v0  ;;  %v2533_v7 = vpack.c.bf16 %v1238_v34, %v1234_v4  ;;  %v1232_v55 = vld [vmem:[#allocation7 + $0x530] sm:$0xff]  ;;  %v1253_v4 = vld [vmem:[#allocation7 + $0x5d8] sm:$0xff]  ;;  %v2643_v47 = vpack.c.bf16 %v1576_v41, %v1574_v40  ;;  %v1468_v40 = vsub.s32 3, %v3171_v18 }
 0x1e0   : > { %2524 = vmatprep.subr.bf16.mxu1 %v2523_v32  ;;  %v1192_v32 = vld [vmem:[#allocation3 + $0x38] sm:$0xff]  ;;  %v2561_v57 = vpack.c.bf16 %v1232_v55, %v1228_v54 }
 0x1e1   : > { %v1257_v34 = vld [vmem:[#allocation7 + $0x5f8] sm:$0xff] }
 0x1e2   : > { %1183 = vmatmul.mubr.f32.gmra.mrb[18].mxu1 %v3192_v46  ;;  %v2537_v46 = vpack.c.bf16 %v1246_v10, %v1242_v9  ;;  %v2571_v6 = vpack.c.bf16 %v1257_v34, %v1253_v4  ;;  %v1691_v10 = vld [vmem:[#allocation9 + $0x3a8] sm:$0xff] }
 0x1e3   : > { %2526 = vmatpush1.bf16.msra.mxu1 %v2525_v59  ;;  %1322 = vmatprep.mubr.f32.mxu1 %v2990_v0  ;;  %v1236_v59 = vld [vmem:[#allocation7 + $0x550] sm:$0xff]  ;;  %v2627_v12 = vpack.c.bf16 %v1693_v11, %v1691_v10 }
 0x1e4   : > { %2528 = vmatprep.subr.bf16.mxu1 %v2527_v60  ;;  %v1240_v60 = vld [vmem:[#allocation7 + $0x570] sm:$0xff] }
 0x1e5   : > { %v2565_v62 = vpack.c.bf16 %v1240_v60, %v1236_v59  ;;  %2628 = vmatprep.subr.bf16.mxu0 %v2627_v12  ;;  %v1577_v59 = vld [vmem:[#allocation9 + $0x40] sm:$0xff]  ;;  %v1579_v60 = vld [vmem:[#allocation9 + $0x50] sm:$0xff]  ;;  %v1586_v12 = vld [vmem:[#allocation9 + $0x88] sm:$0xff] }
 0x1e6   : > { %v1583_v10 = vld [vmem:[#allocation9 + $0x70] sm:$0xff] }
 0x1e7   : > { %2530 = vmatpush1.bf16.msra.mxu1 %v2529_v1  ;;  %v1244_v1 = vld [vmem:[#allocation7 + $0x590] sm:$0xff] }
 0x1e8   : > { %2532 = vmatprep.subr.bf16.mxu1 %v2531_v3  ;;  %v1248_v3 = vld [vmem:[#allocation7 + $0x5b0] sm:$0xff] }
 0x1e9   : > { %v2569_v5 = vpack.c.bf16 %v1248_v3, %v1244_v1  ;;  %v1584_v1 = vld [vmem:[#allocation9 + $0x78] sm:$0xff] }
 0x1eb   : > { %2534 = vmatpush1.bf16.msra.mxu1 %v2533_v7  ;;  %v1252_v7 = vld [vmem:[#allocation7 + $0x5d0] sm:$0xff] }
 0x1ec   : > { %2536 = vmatprep.subr.bf16.mxu1 %v2535_v8  ;;  %v1256_v8 = vld [vmem:[#allocation7 + $0x5f0] sm:$0xff] }
 0x1ed   : > { %v2573_v9 = vpack.c.bf16 %v1256_v8, %v1252_v7  ;;  %v2649_v7 = vpack.c.bf16 %v1579_v60, %v1577_v59 }
 0x1ef   : > { %2538 = vmatpush1.bf16.msra.mxu1 %v2537_v46  ;;  %v1690_v46 = vld [vmem:[#allocation9 + $0x3a0] sm:$0xff] }
 0x1f0   : > { %2540 = vmatprep.subr.bf16.mxu1 %v2539_v13  ;;  %v1692_v13 = vld [vmem:[#allocation9 + $0x3b0] sm:$0xff] }
 0x1f1   : > { %v2629_v14 = vpack.c.bf16 %v1692_v13, %v1690_v46  ;;  %v1588_v46 = vld [vmem:[#allocation9 + $0x98] sm:$0xff] }
 0x1f3   : > { %2542 = vmatpush1.bf16.msra.mxu1 %v2541_v22  ;;  %2630 = vmatpush1.bf16.msra.mxu0 %v2629_v14  ;;  %v1696_v22 = vld [vmem:[#allocation9 + $0x3d0] sm:$0xff] }
 0x1f4   : > { %2544 = vmatprep.subr.bf16.mxu1 %v2543_v23  ;;  %v1699_v23 = vld [vmem:[#allocation9 + $0x3e8] sm:$0xff] }
 0x1f6   : > { %1323 = vmatmul.mubr.f32.vlgmr.msra.gmra.mrb[4].mxu1 %v3186_v38 }
 0x1f7   : > { %2546 = vmatpush1.bf16.msra.mxu1 %v2545_v28  ;;  %1328 = vmatprep.mubr.f32.mxu1 %v2990_v0  ;;  %v1570_v28 = vld [vmem:[#allocation9 + $0x8] sm:$0xff] }
 0x1f8   : > { %2548 = vmatprep.subr.bf16.mxu1 %v2547_v29  ;;  %v1572_v29 = vld [vmem:[#allocation9 + $0x18] sm:$0xff] }
 0x1f9   : > { %v2639_v30 = vpack.c.bf16 %v1572_v29, %v1570_v28  ;;  %v1596_v28 = vld [vmem:[#allocation9 + $0xd8] sm:$0xff]  ;;  %v2661_v29 = vpack.c.bf16 %v1591_v26, %v1589_v25  ;;  %v1613_v26 = vld [vmem:[#allocation9 + $0x160] sm:$0xff] }
 0x1fa   : > { %1329 = vmatmul.mubr.f32.gmra.mrb[6].mxu1 %v3194_v50 }
 0x1fb   : > { %2550 = vmatpush1.bf16.msra.mxu1 %v2549_v36  ;;  %1334 = vmatprep.mubr.f32.mxu1 %v2990_v0  ;;  %v1569_v36 = vld [vmem:[#allocation9] sm:$0xff] }
 0x1fc   : > { %2552 = vmatprep.subr.bf16.mxu1 %v2551_v37  ;;  %v1571_v37 = vld [vmem:[#allocation9 + $0x10] sm:$0xff] }
 0x1fd   : > { %v2641_v45 = vpack.c.bf16 %v1571_v37, %v1569_v36  ;;  %v1598_v36 = vld [vmem:[#allocation9 + $0xe8] sm:$0xff]  ;;  %v1600_v37 = vld [vmem:[#allocation9 + $0xf8] sm:$0xff] }
 0x1fe   : > { %1335 = vmatmul.mubr.f32.gmra.mrb[8].mxu1 %v1191_v48 }
 0x1ff   : > { %2554 = vmatpush1.bf16.msra.mxu1 %v2553_v43  ;;  %1340 = vmatprep.mubr.f32.mxu1 %v2990_v0 }
 0x200   : > { %2556 = vmatprep.subr.bf16.mxu1 %v2555_v44 }
 0x202   : > { %1341 = vmatmul.mubr.f32.gmra.mrb[10].mxu1 %v1192_v32 }
 0x203   : > { %2558 = vmatpush1.bf16.msra.mxu1 %v2557_v52  ;;  %1411 = vmatprep.mubr.f32.mxu1 %v2990_v0  ;;  %v1578_v52 = vld [vmem:[#allocation9 + $0x48] sm:$0xff] }
 0x204   : > { %2560 = vmatprep.subr.bf16.mxu1 %v2559_v53  ;;  %v1580_v53 = vld [vmem:[#allocation9 + $0x58] sm:$0xff] }
 0x207   : > { %2562 = vmatpush1.bf16.msra.mxu1 %v2561_v57 }
 0x208   : > { %2564 = vmatprep.subr.bf16.mxu1 %v2563_v58  ;;  %v2647_v58 = vpack.c.bf16 %v1580_v53, %v1578_v52  ;;  %v1469_v52 = vrot.slane %v3246_v31, %v1468_v40 }
 0x20b   : > { %2566 = vmatpush1.bf16.msra.mxu1 %v2565_v62 }
 0x20c   : > { %2568 = vmatprep.subr.bf16.mxu1 %v2567_v63  ;;  %v1582_v63 = vld [vmem:[#allocation9 + $0x68] sm:$0xff] }
 0x20d   : > { %v2651_v8 = vpack.c.bf16 %v1584_v1, %v1582_v63  ;;  %v1605_v63 = vld [vmem:[#allocation9 + $0x120] sm:$0xff] }
 0x20f   : > { %2570 = vmatpush1.bf16.msra.mxu1 %v2569_v5 }
 0x210   : > { %2572 = vmatprep.subr.bf16.mxu1 %v2571_v6 }
 0x213   : > { %2574 = vmatpush1.bf16.msra.mxu1 %v2573_v9  ;;  %v1581_v9 = vld [vmem:[#allocation9 + $0x60] sm:$0xff] }
 0x216   : > { %1412 = vmatmul.mubr.f32.vlgmr.msra.gmra.mrb[12].mxu1 %v3186_v38  ;;  %v1697_v38 = vld [vmem:[#allocation9 + $0x3d8] sm:$0xff] }
 0x217   : > { %1417 = vmatprep.mubr.f32.mxu1 %v2990_v0  ;;  %v2631_v17 = vpack.c.bf16 %v1697_v38, %v1695_v16  ;;  %v2653_v38 = vpack.c.bf16 %v1583_v10, %v1581_v9 }
 0x219   : > { %2632 = vmatprep.subr.bf16.mxu0 %v2631_v17  ;;  %v2655_v17 = vpack.c.bf16 %v1588_v46, %v1586_v12  ;;  %v1609_v46 = vld [vmem:[#allocation9 + $0x140] sm:$0xff] }
 0x21a   : > { %1418 = vmatmul.mubr.f32.gmra.mrb[14].mxu1 %v3194_v50  ;;  %v2633_v50 = vpack.c.bf16 %v1696_v22, %v1694_v20  ;;  %v1585_v20 = vld [vmem:[#allocation9 + $0x80] sm:$0xff]  ;;  %v1587_v22 = vld [vmem:[#allocation9 + $0x90] sm:$0xff] }
 0x21b   : > { %1423 = vmatprep.mubr.f32.mxu1 %v2990_v0 }
 0x21c   : > { %2634 = vmatpush1.bf16.msra.mxu0 %v2633_v50  ;;  %v1590_v50 = vld [vmem:[#allocation9 + $0xa8] sm:$0xff] }
 0x21e   : > { %1424 = vmatmul.mubr.f32.gmra.mrb[16].mxu1 %v1191_v48  ;;  %v1573_v48 = vld [vmem:[#allocation9 + $0x20] sm:$0xff] }
 0x21f   : > { %1429 = vmatprep.mubr.f32.mxu1 %v2990_v0  ;;  %v2635_v0 = vpack.c.bf16 %v1701_v24, %v1699_v23  ;;  %v2645_v2 = vpack.c.bf16 %v1575_v49, %v1573_v48  ;;  %v1592_v23 = vld [vmem:[#allocation9 + $0xb8] sm:$0xff]  ;;  %v2657_v24 = vpack.c.bf16 %v1587_v22, %v1585_v20  ;;  %v1602_v48 = vld [vmem:[#allocation9 + $0x108] sm:$0xff] }
 0x220   : > { %v1604_v49 = vld [vmem:[#allocation9 + $0x118] sm:$0xff] }
 0x221   : > { %2636 = vmatprep.subr.bf16.mxu0 %v2635_v0  ;;  %v2659_v0 = vpack.c.bf16 %v1592_v23, %v1590_v50  ;;  %v1616_v20 = vld [vmem:[#allocation9 + $0x178] sm:$0xff] }
 0x222   : > { %1430 = vmatmul.mubr.f32.gmra.mrb[18].mxu1 %v1192_v32  ;;  %2638 = vmatpush1.bf16.msra.mxu0 %v2637_v27  ;;  %v1594_v27 = vld [vmem:[#allocation9 + $0xc8] sm:$0xff] }
 0x223   : > { %2640 = vmatprep.subr.bf16.mxu0 %v2639_v30  ;;  %v2663_v30 = vpack.c.bf16 %v1596_v28, %v1594_v27  ;;  %v1615_v27 = vld [vmem:[#allocation9 + $0x170] sm:$0xff] }
 0x2c9   : > { %v1324_v39 = vpop.f32.mrb[4].mxu1 }
 0x2ca   : > { %v3252_v42 = vadd.f32 %v1457_v33, %v1324_v39  ;;  %v1326_v43 = vpop.f32.mrb[5].mxu1  ;;  %v1464_v39 = vsub.s32 2, %v3171_v18  ;;  %v1606_v18 = vld [vmem:[#allocation9 + $0x128] sm:$0xff] }
 0x2cb   : > { %v3254_v44 = vadd.f32 %v1461_v35, %v1326_v43  ;;  %v2667_v43 = vpack.c.bf16 %v1600_v37, %v1598_v36 }
 0x2cc   : > { %v1536_v56 = vrot.slane %v3252_v42, 1 }
 0x2cd   : > { %v1330_v51 = vpop.f32.mrb[6].mxu1  ;;  %1766 = vmatprep.mubr.f32.mxu0 %v3254_v44  ;;  %v1539_v61 = vrot.slane %v3254_v44, 1 }
 0x2ce   : > { %v3257_v54 = vadd.f32 %v1457_v33, %v1330_v51  ;;  %v1332_v55 = vpop.f32.mrb[7].mxu1  ;;  %1767 = vmatmul.mubr.f32.vlgmr.msra.gmra.mrb[4].mxu0 %v3252_v42  ;;  %v1465_v51 = vrot.slane %v3246_v31, %v1464_v39  ;;  %v1607_v31 = vld [vmem:[#allocation9 + $0x130] sm:$0xff]  ;;  %v2685_v39 = vpack.c.bf16 %v1615_v27, %v1613_v26  ;;  %v1949_v26 = vld [vmem:[#allocation9 + $0x420] sm:$0xff] }
 0x2cf   : > { %v3260_v32 = vadd.f32 %v1461_v35, %v1332_v55  ;;  %2642 = vmatpush1.bf16.msra.mxu0 %v2641_v45  ;;  %v1597_v45 = vld [vmem:[#allocation9 + $0xe0] sm:$0xff]  ;;  %v2671_v55 = vpack.c.bf16 %v1604_v49, %v1602_v48  ;;  %v1622_v48 = vld [vmem:[#allocation9 + $0x1a8] sm:$0xff]  ;;  %v1624_v49 = vld [vmem:[#allocation9 + $0x1b8] sm:$0xff] }
 0x2d0   : > { %v1537_v57 = vrot.slane %v3257_v54, 1  ;;  %2644 = vmatprep.subr.bf16.mxu0 %v2643_v47  ;;  %v1599_v47 = vld [vmem:[#allocation9 + $0xf0] sm:$0xff] }
 0x2d1   : > { %v1540_v15 = vrot.slane %v3260_v32, 1  ;;  %v1336_v62 = vpop.f32.mrb[8].mxu1  ;;  %1772 = vmatprep.mubr.f32.mxu0 %v3260_v32  ;;  %v2669_v53 = vpack.c.bf16 %v1599_v47, %v1597_v45  ;;  %v1619_v45 = vld [vmem:[#allocation9 + $0x190] sm:$0xff] }
 0x2d2   : > { %v3268_v3 = vsel %vm1535_vm1, %v1536_v56, %v1537_v57  ;;  %1548 = vst [vmem:[#allocation4 + $0xb0] sm:$0x7f] %v1537_v57  ;;  %v3270_v4 = vadd.f32 %v1457_v33, %v1336_v62  ;;  %v1338_v34 = vpop.f32.mrb[9].mxu1  ;;  %1773 = vmatmul.mubr.f32.gmra.mrb[6].mxu0 %v3257_v54  ;;  %v1603_v56 = vld [vmem:[#allocation9 + $0x110] sm:$0xff] }
 0x2d3   : > { %v3274_v5 = vsel %vm1535_vm1, %v1539_v61, %v1540_v15  ;;  %1549 = vst [vmem:[#allocation4 + $0xb8] sm:$0x7f] %v1540_v15  ;;  %v3276_v6 = vadd.f32 %v1461_v35, %v1338_v34  ;;  %2646 = vmatpush1.bf16.msra.mxu0 %v2645_v2  ;;  %v1601_v2 = vld [vmem:[#allocation9 + $0x100] sm:$0xff]  ;;  %v1610_v34 = vld [vmem:[#allocation9 + $0x148] sm:$0xff]  ;;  %v1951_v27 = vld [vmem:[#allocation9 + $0x430] sm:$0xff] }
 0x2d4   : > { %2648 = vmatprep.subr.bf16.mxu0 %v2647_v58  ;;  %v1608_v58 = vld [vmem:[#allocation9 + $0x138] sm:$0xff]  ;;  %v2673_v15 = vpack.c.bf16 %v1603_v56, %v1601_v2  ;;  %v1621_v2 = vld [vmem:[#allocation9 + $0x1a0] sm:$0xff]  ;;  %v1623_v56 = vld [vmem:[#allocation9 + $0x1b0] sm:$0xff] }
 0x2d5   : > { %v1342_v11 = vpop.f32.mrb[10].mxu1  ;;  %v2675_v62 = vpack.c.bf16 %v1608_v58, %v1606_v18  ;;  %v1628_v18 = vld [vmem:[#allocation9 + $0x1d8] sm:$0xff]  ;;  %v2693_v58 = vpack.c.bf16 %v1623_v56, %v1621_v2  ;;  %v1961_v56 = vld [vmem:[#allocation9 + $0x480] sm:$0xff] }
 0x2d6   : > { %v3278_v13 = vadd.f32 %v1457_v33, %v1342_v11  ;;  %v1344_v14 = vpop.f32.mrb[11].mxu1  ;;  %v1593_v33 = vld [vmem:[#allocation9 + $0xc0] sm:$0xff]  ;;  %v2677_v11 = vpack.c.bf16 %v1607_v31, %v1605_v63  ;;  %v1630_v63 = vld [vmem:[#allocation9 + $0x1e8] sm:$0xff]  ;;  %v1632_v31 = vld [vmem:[#allocation9 + $0x1f8] sm:$0xff] }
 0x2d7   : > { %v3280_v16 = vadd.f32 %v1461_v35, %v1344_v14  ;;  %2650 = vmatpush1.bf16.msra.mxu0 %v2649_v7  ;;  %v1595_v35 = vld [vmem:[#allocation9 + $0xd0] sm:$0xff]  ;;  %v1612_v7 = vld [vmem:[#allocation9 + $0x158] sm:$0xff] }
 0x2d8   : > { %2652 = vmatprep.subr.bf16.mxu0 %v2651_v8  ;;  %v2665_v41 = vpack.c.bf16 %v1595_v35, %v1593_v33  ;;  %v2679_v12 = vpack.c.bf16 %v1612_v7, %v1610_v34  ;;  %v1611_v14 = vld [vmem:[#allocation9 + $0x150] sm:$0xff]  ;;  %v1620_v33 = vld [vmem:[#allocation9 + $0x198] sm:$0xff]  ;;  %v2699_v7 = vpack.c.bf16 %v1632_v31, %v1630_v63  ;;  %v1969_v31 = vld [vmem:[#allocation9 + $0x4c0] sm:$0xff] }
 0x2db   : > { %2654 = vmatpush1.bf16.msra.mxu0 %v2653_v38 }
 0x2dc   : > { %2656 = vmatprep.subr.bf16.mxu0 %v2655_v17  ;;  %v1614_v17 = vld [vmem:[#allocation9 + $0x168] sm:$0xff] }
 0x2dd   : > { %v2683_v25 = vpack.c.bf16 %v1616_v20, %v1614_v17  ;;  %v1945_v17 = vld [vmem:[#allocation9 + $0x400] sm:$0xff]  ;;  %v1947_v20 = vld [vmem:[#allocation9 + $0x410] sm:$0xff] }
 0x2df   : > { %2658 = vmatpush1.bf16.msra.mxu0 %v2657_v24  ;;  %v2681_v24 = vpack.c.bf16 %v1611_v14, %v1609_v46  ;;  %v1948_v46 = vld [vmem:[#allocation9 + $0x418] sm:$0xff] }
 0x2e0   : > { %2660 = vmatprep.subr.bf16.mxu0 %v2659_v0 }
 0x2e3   : > { %2662 = vmatpush1.bf16.msra.mxu0 %v2661_v29 }
 0x2e4   : > { %2664 = vmatprep.subr.bf16.mxu0 %v2663_v30  ;;  %v1618_v30 = vld [vmem:[#allocation9 + $0x188] sm:$0xff] }
 0x2e7   : > { %2666 = vmatpush1.bf16.msra.mxu0 %v2665_v41  ;;  %v2687_v41 = vpack.c.bf16 %v1620_v33, %v1618_v30  ;;  %v1956_v30 = vld [vmem:[#allocation9 + $0x458] sm:$0xff]  ;;  %v2709_v33 = vpack.c.bf16 %v1951_v27, %v1949_v26  ;;  %v1981_v27 = vld [vmem:[#allocation9 + $0x520] sm:$0xff] }
 0x2e8   : > { %2668 = vmatprep.subr.bf16.mxu0 %v2667_v43  ;;  %v1617_v43 = vld [vmem:[#allocation9 + $0x180] sm:$0xff] }
 0x2e9   : > { %v1413_v57 = vpop.f32.mrb[12].mxu1 }
 0x2ea   : > { %v3286_v59 = vadd.f32 %v1465_v51, %v1413_v57  ;;  %v1415_v60 = vpop.f32.mrb[13].mxu1  ;;  %v1626_v57 = vld [vmem:[#allocation9 + $0x1c8] sm:$0xff] }
 0x2eb   : > { %v3288_v61 = vadd.f32 %v1469_v52, %v1415_v60  ;;  %2670 = vmatpush1.bf16.msra.mxu0 %v2669_v53  ;;  %v2695_v60 = vpack.c.bf16 %v1628_v18, %v1626_v57  ;;  %v1966_v57 = vld [vmem:[#allocation9 + $0x4a8] sm:$0xff] }
 0x2ec   : > { %2672 = vmatprep.subr.bf16.mxu0 %v2671_v55  ;;  %v2691_v55 = vpack.c.bf16 %v1624_v49, %v1622_v48  ;;  %v1957_v48 = vld [vmem:[#allocation9 + $0x460] sm:$0xff]  ;;  %v1959_v49 = vld [vmem:[#allocation9 + $0x470] sm:$0xff] }
 0x2ed   : > { %v1419_v1 = vpop.f32.mrb[14].mxu1  ;;  %1778 = vmatprep.mubr.f32.mxu0 %v3288_v61 }
 0x2ee   : > { %v3291_v8 = vadd.f32 %v1465_v51, %v1419_v1  ;;  %v1421_v9 = vpop.f32.mrb[15].mxu1  ;;  %1779 = vmatmul.mubr.f32.gmra.mrb[8].mxu0 %v3286_v59 }
 0x2ef   : > { %v3294_v10 = vadd.f32 %v1469_v52, %v1421_v9  ;;  %2674 = vmatpush1.bf16.msra.mxu0 %v2673_v15  ;;  %v1625_v15 = vld [vmem:[#allocation9 + $0x1c0] sm:$0xff] }
 0x2f0   : > { %2676 = vmatprep.subr.bf16.mxu0 %v2675_v62  ;;  %v1627_v62 = vld [vmem:[#allocation9 + $0x1d0] sm:$0xff]  ;;  %v1629_v9 = vld [vmem:[#allocation9 + $0x1e0] sm:$0xff] }
 0x2f1   : > { %v1425_v38 = vpop.f32.mrb[16].mxu1  ;;  %1784 = vmatprep.mubr.f32.mxu0 %v3294_v10  ;;  %v2697_v34 = vpack.c.bf16 %v1627_v62, %v1625_v15  ;;  %v1970_v15 = vld [vmem:[#allocation9 + $0x4c8] sm:$0xff] }
 0x2f2   : > { %v3297_v22 = vadd.f32 %v1465_v51, %v1425_v38  ;;  %v1427_v50 = vpop.f32.mrb[17].mxu1  ;;  %1785 = vmatmul.mubr.f32.gmra.mrb[10].mxu0 %v3291_v8 }
 0x2f3   : > { %v3300_v23 = vadd.f32 %v1469_v52, %v1427_v50  ;;  %2678 = vmatpush1.bf16.msra.mxu0 %v2677_v11  ;;  %1790 = vmatprep.mubr.f32.mxu0 %v3276_v6  ;;  %v1631_v11 = vld [vmem:[#allocation9 + $0x1f0] sm:$0xff]  ;;  %v1950_v50 = vld [vmem:[#allocation9 + $0x428] sm:$0xff] }
 0x2f4   : > { %v1517_v0 = vrot.slane %v3297_v22, 7  ;;  %2680 = vmatprep.subr.bf16.mxu0 %v2679_v12  ;;  %v1946_v12 = vld [vmem:[#allocation9 + $0x408] sm:$0xff]  ;;  %v2701_v14 = vpack.c.bf16 %v1631_v11, %v1629_v9  ;;  %v1973_v11 = vld [vmem:[#allocation9 + $0x4e0] sm:$0xff] }
 0x2f5   : > { %v1518_v28 = vrot.slane %v3300_v23, 7  ;;  %v1431_v29 = vpop.f32.mrb[18].mxu1  ;;  %v2703_v38 = vpack.c.bf16 %v1948_v46, %v1946_v12  ;;  %v1975_v12 = vld [vmem:[#allocation9 + $0x4f0] sm:$0xff]  ;;  %v1978_v46 = vld [vmem:[#allocation9 + $0x508] sm:$0xff] }
 0x2f6   : > { %1527 = vst [vmem:[#allocation4] sm:$0xfe] %v1517_v0  ;;  %v3305_v35 = vadd.f32 %v1465_v51, %v1431_v29  ;;  %v1433_v36 = vpop.f32.mrb[19].mxu1  ;;  %1791 = vmatmul.mubr.f32.gmra.mrb[12].mxu0 %v3270_v4  ;;  %v1954_v29 = vld [vmem:[#allocation9 + $0x448] sm:$0xff] }
 0x2f7   : > { %1528 = vst [vmem:[#allocation4 + $0x8] sm:$0xfe] %v1518_v28  ;;  %v3308_v37 = vadd.f32 %v1469_v52, %v1433_v36  ;;  %2682 = vmatpush1.bf16.msra.mxu0 %v2681_v24  ;;  %1796 = vmatprep.mubr.f32.mxu0 %v3280_v16  ;;  %v2689_v52 = vpack.c.bf16 %v1619_v45, %v1617_v43  ;;  %v1952_v24 = vld [vmem:[#allocation9 + $0x438] sm:$0xff] }
 0x2f8   : > { %v1519_v40 = vrot.slane %v3305_v35, 7  ;;  %2684 = vmatprep.subr.bf16.mxu0 %v2683_v25  ;;  %v2707_v25 = vpack.c.bf16 %v1952_v24, %v1950_v50  ;;  %v2711_v36 = vpack.c.bf16 %v1956_v30, %v1954_v29  ;;  %v1960_v43 = vld [vmem:[#allocation9 + $0x478] sm:$0xff]  ;;  %v1979_v50 = vld [vmem:[#allocation9 + $0x510] sm:$0xff]  ;;  %v1982_v24 = vld [vmem:[#allocation9 + $0x528] sm:$0xff] }
 0x2f9   : > { %v1521_v47 = vrot.slane %v3308_v37, 7  ;;  %v1986_v29 = vld [vmem:[#allocation9 + $0x548] sm:$0xff]  ;;  %v1988_v30 = vld [vmem:[#allocation9 + $0x558] sm:$0xff] }
 0x2fa   : > { %v1520_v51 = vsel %vm1516_vm2, %v1517_v0, %v1519_v40  ;;  %1797 = vmatmul.mubr.f32.gmra.mrb[14].mxu0 %v3278_v13  ;;  %v2705_v0 = vpack.c.bf16 %v1947_v20, %v1945_v17  ;;  %v1955_v40 = vld [vmem:[#allocation9 + $0x450] sm:$0xff]  ;;  %v1977_v20 = vld [vmem:[#allocation9 + $0x500] sm:$0xff] }
 0x2fb   : > { %v1522_v53 = vsel %vm1516_vm2, %v1518_v28, %v1521_v47  ;;  %2686 = vmatpush1.bf16.msra.mxu0 %v2685_v39  ;;  %1802 = vmatprep.mubr.f32.mxu0 %v3300_v23  ;;  %v1953_v39 = vld [vmem:[#allocation9 + $0x440] sm:$0xff] }
 0x2fc   : > { %2688 = vmatprep.subr.bf16.mxu0 %v2687_v41  ;;  %v1958_v41 = vld [vmem:[#allocation9 + $0x468] sm:$0xff]  ;;  %v2713_v45 = vpack.c.bf16 %v1955_v40, %v1953_v39  ;;  %v1985_v39 = vld [vmem:[#allocation9 + $0x540] sm:$0xff]  ;;  %v1987_v40 = vld [vmem:[#allocation9 + $0x550] sm:$0xff] }
 0x2fd   : > { %v1553_v28 = vld [vmem:[#allocation4] sm:$0xff]  ;;  %v2715_v47 = vpack.c.bf16 %v1960_v43, %v1958_v41  ;;  %v1990_v41 = vld [vmem:[#allocation9 + $0x568] sm:$0xff]  ;;  %v1992_v43 = vld [vmem:[#allocation9 + $0x578] sm:$0xff] }
 0x2fe   : > { %1803 = vmatmul.mubr.f32.gmra.mrb[16].mxu0 %v3297_v22  ;;  %v1554_v1 = vld [vmem:[#allocation4 + $0x8] sm:$0xff] }
 0x2ff   : > { %2690 = vmatpush1.bf16.msra.mxu0 %v2689_v52  ;;  %1808 = vmatprep.mubr.f32.mxu0 %v3308_v37  ;;  %v1962_v52 = vld [vmem:[#allocation9 + $0x488] sm:$0xff] }
 0x300   : > { %2692 = vmatprep.subr.bf16.mxu0 %v2691_v55  ;;  %v1964_v55 = vld [vmem:[#allocation9 + $0x498] sm:$0xff] }
 0x301   : > { %v2719_v2 = vpack.c.bf16 %v1964_v55, %v1962_v52  ;;  %v1996_v52 = vld [vmem:[#allocation9 + $0x598] sm:$0xff] }
 0x302   : > { %1809 = vmatmul.mubr.f32.gmra.mrb[18].mxu0 %v3305_v35 }
 0x303   : > { %2694 = vmatpush1.bf16.msra.mxu0 %v2693_v58  ;;  %1879 = vmatprep.mubr.f32.mxu0 %v1554_v1  ;;  %v1974_v1 = vld [vmem:[#allocation9 + $0x4e8] sm:$0xff] }
 0x304   : > { %2696 = vmatprep.subr.bf16.mxu0 %v2695_v60  ;;  %v1965_v60 = vld [vmem:[#allocation9 + $0x4a0] sm:$0xff] }
 0x307   : > { %2698 = vmatpush1.bf16.msra.mxu0 %v2697_v34  ;;  %v1976_v34 = vld [vmem:[#allocation9 + $0x4f8] sm:$0xff] }
 0x308   : > { %2700 = vmatprep.subr.bf16.mxu0 %v2699_v7  ;;  %v2731_v9 = vpack.c.bf16 %v1976_v34, %v1974_v1  ;;  %v2008_v1 = vld [vmem:[#allocation9 + $0x5f8] sm:$0xff] }
 0x30b   : > { %2702 = vmatpush1.bf16.msra.mxu0 %v2701_v14  ;;  %v1980_v14 = vld [vmem:[#allocation9 + $0x518] sm:$0xff] }
 0x30c   : > { %2704 = vmatprep.subr.bf16.mxu0 %v2703_v38  ;;  %v2733_v38 = vpack.c.bf16 %v1975_v12, %v1973_v11  ;;  %v2735_v17 = vpack.c.bf16 %v1980_v14, %v1978_v46  ;;  %v2007_v11 = vld [vmem:[#allocation9 + $0x5f0] sm:$0xff] }
 0x30e   : > { %1880 = vmatmul.mubr.f32.vlgmr.msra.gmra.mrb[4].mxu0 %v1553_v28  ;;  %v1983_v28 = vld [vmem:[#allocation9 + $0x530] sm:$0xff] }
 0x30f   : > { %1885 = vmatprep.mubr.f32.mxu0 %v1522_v53  ;;  %2706 = vmatpush1.bf16.msra.mxu0 %v2705_v0  ;;  %v2717_v53 = vpack.c.bf16 %v1959_v49, %v1957_v48  ;;  %v1984_v0 = vld [vmem:[#allocation9 + $0x538] sm:$0xff]  ;;  %v1991_v48 = vld [vmem:[#allocation9 + $0x570] sm:$0xff]  ;;  %v1994_v49 = vld [vmem:[#allocation9 + $0x588] sm:$0xff] }
 0x310   : > { %2708 = vmatprep.subr.bf16.mxu0 %v2707_v25  ;;  %v2737_v25 = vpack.c.bf16 %v1979_v50, %v1977_v20  ;;  %v2739_v26 = vpack.c.bf16 %v1984_v0, %v1982_v24 }
 0x312   : > { %1886 = vmatmul.mubr.f32.gmra.mrb[6].mxu0 %v1520_v51  ;;  %v1963_v51 = vld [vmem:[#allocation9 + $0x490] sm:$0xff] }
 0x313   : > { %1891 = vmatprep.mubr.f32.mxu0 %v3254_v44  ;;  %2710 = vmatpush1.bf16.msra.mxu0 %v2709_v33  ;;  %v1968_v44 = vld [vmem:[#allocation9 + $0x4b8] sm:$0xff]  ;;  %v2721_v18 = vpack.c.bf16 %v1963_v51, %v1961_v56  ;;  %v2741_v33 = vpack.c.bf16 %v1983_v28, %v1981_v27  ;;  %v1995_v56 = vld [vmem:[#allocation9 + $0x590] sm:$0xff]  ;;  %v1998_v51 = vld [vmem:[#allocation9 + $0x5a8] sm:$0xff] }
 0x314   : > { %2712 = vmatprep.subr.bf16.mxu0 %v2711_v36  ;;  %v2723_v58 = vpack.c.bf16 %v1968_v44, %v1966_v57  ;;  %v2743_v36 = vpack.c.bf16 %v1988_v30, %v1986_v29  ;;  %v2000_v57 = vld [vmem:[#allocation9 + $0x5b8] sm:$0xff] }
 0x316   : > { %1892 = vmatmul.mubr.f32.gmra.mrb[8].mxu0 %v3252_v42  ;;  %v1967_v42 = vld [vmem:[#allocation9 + $0x4b0] sm:$0xff] }
 0x317   : > { %1897 = vmatprep.mubr.f32.mxu0 %v3260_v32  ;;  %2714 = vmatpush1.bf16.msra.mxu0 %v2713_v45  ;;  %v1972_v32 = vld [vmem:[#allocation9 + $0x4d8] sm:$0xff]  ;;  %v2725_v62 = vpack.c.bf16 %v1967_v42, %v1965_v60  ;;  %v2745_v45 = vpack.c.bf16 %v1987_v40, %v1985_v39  ;;  %v1999_v60 = vld [vmem:[#allocation9 + $0x5b0] sm:$0xff]  ;;  %v2002_v42 = vld [vmem:[#allocation9 + $0x5c8] sm:$0xff] }
 0x318   : > { %2716 = vmatprep.subr.bf16.mxu0 %v2715_v47  ;;  %v2727_v63 = vpack.c.bf16 %v1972_v32, %v1970_v15  ;;  %v2747_v47 = vpack.c.bf16 %v1992_v43, %v1990_v41  ;;  %v2004_v15 = vld [vmem:[#allocation9 + $0x5d8] sm:$0xff] }
 0x31a   : > { %1898 = vmatmul.mubr.f32.gmra.mrb[10].mxu0 %v3257_v54  ;;  %v1971_v54 = vld [vmem:[#allocation9 + $0x4d0] sm:$0xff] }
 0x31b   : > { %1903 = vmatprep.mubr.f32.mxu0 %v3288_v61  ;;  %2718 = vmatpush1.bf16.msra.mxu0 %v2717_v53  ;;  %v2729_v7 = vpack.c.bf16 %v1971_v54, %v1969_v31  ;;  %v2751_v53 = vpack.c.bf16 %v1996_v52, %v1994_v49  ;;  %v2003_v31 = vld [vmem:[#allocation9 + $0x5d0] sm:$0xff]  ;;  %v2006_v54 = vld [vmem:[#allocation9 + $0x5e8] sm:$0xff] }
 0x31c   : > { %2720 = vmatprep.subr.bf16.mxu0 %v2719_v2  ;;  %v1993_v2 = vld [vmem:[#allocation9 + $0x580] sm:$0xff] }
 0x31d   : > { %v2753_v44 = vpack.c.bf16 %v1995_v56, %v1993_v2 }
 0x31e   : > { %1904 = vmatmul.mubr.f32.gmra.mrb[12].mxu0 %v3286_v59 }
 0x31f   : > { %1909 = vmatprep.mubr.f32.mxu0 %v3294_v10  ;;  %2722 = vmatpush1.bf16.msra.mxu0 %v2721_v18  ;;  %v2755_v18 = vpack.c.bf16 %v2000_v57, %v1998_v51 }
 0x320   : > { %2724 = vmatprep.subr.bf16.mxu0 %v2723_v58  ;;  %v1997_v58 = vld [vmem:[#allocation9 + $0x5a0] sm:$0xff] }
 0x321   : > { %v2757_v32 = vpack.c.bf16 %v1999_v60, %v1997_v58 }
 0x322   : > { %1910 = vmatmul.mubr.f32.gmra.mrb[14].mxu0 %v3291_v8 }
 0x323   : > { %1915 = vmatprep.mubr.f32.mxu0 %v3276_v6  ;;  %2726 = vmatpush1.bf16.msra.mxu0 %v2725_v62  ;;  %v2759_v62 = vpack.c.bf16 %v2004_v15, %v2002_v42 }
 0x324   : > { %2728 = vmatprep.subr.bf16.mxu0 %v2727_v63  ;;  %v2001_v63 = vld [vmem:[#allocation9 + $0x5c0] sm:$0xff] }
 0x325   : > { %v2761_v34 = vpack.c.bf16 %v2003_v31, %v2001_v63 }
 0x326   : > { %1916 = vmatmul.mubr.f32.gmra.mrb[16].mxu0 %v3270_v4 }
 0x327   : > { %1921 = vmatprep.mubr.f32.mxu0 %v3280_v16  ;;  %2730 = vmatpush1.bf16.msra.mxu0 %v2729_v7  ;;  %v2763_v7 = vpack.c.bf16 %v2008_v1, %v2006_v54 }
 0x328   : > { %2732 = vmatprep.subr.bf16.mxu0 %v2731_v9  ;;  %v2005_v9 = vld [vmem:[#allocation9 + $0x5e0] sm:$0xff] }
 0x329   : > { %v2765_v12 = vpack.c.bf16 %v2007_v11, %v2005_v9 }
 0x32a   : > { %1922 = vmatmul.mubr.f32.gmra.mrb[18].mxu0 %v3278_v13 }
 0x32b   : > { %2734 = vmatpush1.bf16.msra.mxu0 %v2733_v38  ;;  %2073 = vmatprep.mubr.f32.mxu0 %v3288_v61  ;;  %v1989_v61 = vld [vmem:[#allocation9 + $0x560] sm:$0xff] }
 0x32c   : > { %2736 = vmatprep.subr.bf16.mxu0 %v2735_v17  ;;  %v2749_v55 = vpack.c.bf16 %v1991_v48, %v1989_v61 }
 0x32f   : > { %2738 = vmatpush1.bf16.msra.mxu0 %v2737_v25 }
 0x330   : > { %2740 = vmatprep.subr.bf16.mxu0 %v2739_v26 }
 0x333   : > { %2742 = vmatpush1.bf16.msra.mxu0 %v2741_v33 }
 0x334   : > { %2744 = vmatprep.subr.bf16.mxu0 %v2743_v36 }
 0x337   : > { %2746 = vmatpush1.bf16.msra.mxu0 %v2745_v45 }
 0x338   : > { %2748 = vmatprep.subr.bf16.mxu0 %v2747_v47 }
 0x33b   : > { %2750 = vmatpush1.bf16.msra.mxu0 %v2749_v55 }
 0x33c   : > { %2752 = vmatprep.subr.bf16.mxu0 %v2751_v53 }
 0x33f   : > { %2754 = vmatpush1.bf16.msra.mxu0 %v2753_v44 }
 0x340   : > { %2756 = vmatprep.subr.bf16.mxu0 %v2755_v18 }
 0x343   : > { %2758 = vmatpush1.bf16.msra.mxu0 %v2757_v32 }
 0x344   : > { %2760 = vmatprep.subr.bf16.mxu0 %v2759_v62 }
 0x347   : > { %2762 = vmatpush1.bf16.msra.mxu0 %v2761_v34 }
 0x348   : > { %2764 = vmatprep.subr.bf16.mxu0 %v2763_v7 }
 0x34b   : > { %2766 = vmatpush1.bf16.msra.mxu0 %v2765_v12 }
 0x34e   : > { %2074 = vmatmul.mubr.f32.vlgmr.msra.gmra.mrb[4].mxu0 %v3286_v59  ;;  %v1943_v59 = vld [vmem:[#allocation4 + $0xb8] sm:$0xff] }
 0x34f   : > { %2079 = vmatprep.mubr.f32.mxu0 %v3294_v10 }
 0x352   : > { %2080 = vmatmul.mubr.f32.gmra.mrb[6].mxu0 %v3291_v8 }
 0x353   : > { %2085 = vmatprep.mubr.f32.mxu0 %v3276_v6  ;;  %v1942_v6 = vld [vmem:[#allocation4 + $0xb0] sm:$0xff] }
 0x356   : > { %2086 = vmatmul.mubr.f32.gmra.mrb[8].mxu0 %v3270_v4  ;;  %v2138_v4 = vld [vmem:[%s3380_s6] sm:$0x3] }
 0x357   : > { %2091 = vmatprep.mubr.f32.mxu0 %v3280_v16  ;;  %v2147_v16 = vrot.slane %v2138_v4, %v3180_v21 }
 0x35a   : > { %2092 = vmatmul.mubr.f32.gmra.mrb[10].mxu0 %v3278_v13  ;;  %v2143_v13 = vrot.slane %v2138_v4, %v3174_v19 }
 0x35b   : > { %2097 = vmatprep.mubr.f32.mxu0 %v3300_v23 }
 0x35e   : > { %2098 = vmatmul.mubr.f32.gmra.mrb[12].mxu0 %v3297_v22 }
 0x35f   : > { %2103 = vmatprep.mubr.f32.mxu0 %v3308_v37 }
 0x362   : > { %2104 = vmatmul.mubr.f32.gmra.mrb[14].mxu0 %v3305_v35 }
 0x363   : > { %2109 = vmatprep.mubr.f32.mxu0 %v3274_v5 }
 0x366   : > { %2110 = vmatmul.mubr.f32.gmra.mrb[16].mxu0 %v3268_v3 }
 0x367   : > { %2115 = vmatprep.mubr.f32.mxu0 %v1943_v59 }
 0x36a   : > { %2116 = vmatmul.mubr.f32.gmra.mrb[18].mxu0 %v1942_v6 }
 0x421   : > { %v2075_v3 = vpop.f32.mrb[4].mxu0 }
 0x422   : > { %v2150_v5 = vadd.f32 %v2143_v13, %v2075_v3  ;;  %v2077_v8 = vpop.f32.mrb[5].mxu0 }
 0x423   : > { %v2151_v10 = vadd.f32 %v2147_v16, %v2077_v8 }
 0x424   : > { %2166 = vst [vmem:[%s3353_s22] sm:$0xff] %v2150_v5 }
 0x425   : > { %2167 = vst [vmem:[%s3353_s22 + $0x8] sm:$0xff] %v2151_v10  ;;  %v2081_v19 = vpop.f32.mrb[6].mxu0 }
 0x426   : > { %v2152_v21 = vadd.f32 %v2143_v13, %v2081_v19  ;;  %v2083_v22 = vpop.f32.mrb[7].mxu0 }
 0x427   : > { %v2153_v23 = vadd.f32 %v2147_v16, %v2083_v22 }
 0x428   : > { %2168 = vst [vmem:[%s3353_s22 + $0x10] sm:$0xff] %v2152_v21 }
 0x429   : > { %2169 = vst [vmem:[%s3353_s22 + $0x18] sm:$0xff] %v2153_v23  ;;  %v2087_v35 = vpop.f32.mrb[8].mxu0 }
 0x42a   : > { %v2154_v37 = vadd.f32 %v2143_v13, %v2087_v35  ;;  %v2089_v46 = vpop.f32.mrb[9].mxu0 }
 0x42b   : > { %v2155_v14 = vadd.f32 %v2147_v16, %v2089_v46 }
 0x42c   : > { %2170 = vst [vmem:[%s3353_s22 + $0x20] sm:$0xff] %v2154_v37 }
 0x42d   : > { %2171 = vst [vmem:[%s3353_s22 + $0x28] sm:$0xff] %v2155_v14  ;;  %v2093_v38 = vpop.f32.mrb[10].mxu0 }
 0x42e   : > { %v2156_v17 = vadd.f32 %v2143_v13, %v2093_v38  ;;  %v2095_v20 = vpop.f32.mrb[11].mxu0 }
 0x42f   : > { %v2157_v50 = vadd.f32 %v2147_v16, %v2095_v20 }
 0x430   : > { %2172 = vst [vmem:[%s3353_s22 + $0x30] sm:$0xff] %v2156_v17 }
 0x431   : > { %2173 = vst [vmem:[%s3353_s22 + $0x38] sm:$0xff] %v2157_v50  ;;  %v2099_v24 = vpop.f32.mrb[12].mxu0 }
 0x432   : > { %v2158_v0 = vadd.f32 %v2143_v13, %v2099_v24  ;;  %v2101_v25 = vpop.f32.mrb[13].mxu0 }
 0x433   : > { %v2159_v26 = vadd.f32 %v2147_v16, %v2101_v25 }
 0x434   : > { %2174 = vst [vmem:[%s3353_s22 + $0x40] sm:$0xff] %v2158_v0 }
 0x435   : > { %2175 = vst [vmem:[%s3353_s22 + $0x48] sm:$0xff] %v2159_v26  ;;  %v2105_v27 = vpop.f32.mrb[14].mxu0 }
 0x436   : > { %v2160_v28 = vadd.f32 %v2143_v13, %v2105_v27  ;;  %v2107_v29 = vpop.f32.mrb[15].mxu0 }
 0x437   : > { %v2161_v30 = vadd.f32 %v2147_v16, %v2107_v29 }
 0x438   : > { %2176 = vst [vmem:[%s3353_s22 + $0x50] sm:$0xff] %v2160_v28 }
 0x439   : > { %2177 = vst [vmem:[%s3353_s22 + $0x58] sm:$0xff] %v2161_v30  ;;  %v2111_v33 = vpop.f32.mrb[16].mxu0 }
 0x43a   : > { %v2162_v36 = vadd.f32 %v2143_v13, %v2111_v33  ;;  %v2113_v39 = vpop.f32.mrb[17].mxu0 }
 0x43b   : > { %v2163_v40 = vadd.f32 %v2147_v16, %v2113_v39 }
 0x43c   : > { %2178 = vst [vmem:[%s3353_s22 + $0x60] sm:$0xff] %v2162_v36 }
 0x43d   : > { %2179 = vst [vmem:[%s3353_s22 + $0x68] sm:$0xff] %v2163_v40  ;;  %v2117_v41 = vpop.f32.mrb[18].mxu0 }
 0x43e   : > { %v2164_v43 = vadd.f32 %v2143_v13, %v2117_v41  ;;  %v2119_v45 = vpop.f32.mrb[19].mxu0 }
 0x43f   : > { %v2165_v47 = vadd.f32 %v2147_v16, %v2119_v45 }
 0x440   : > { %2180 = vst [vmem:[%s3353_s22 + $0x70] sm:$0xff] %v2164_v43 }
 0x441   : > { %2181 = vst [vmem:[%s3353_s22 + $0x78] sm:$0xff] %v2165_v47 }
 0x442 PF: > { %s19_s24 = sadd.s32 1, %s2981_s24  }
 0x443   : > { %p16_p5 = scmp.ge.s32.totalorder %s19_s24, 4  }
 0x445   :  { %18 = sbr.rel (!%p16_p5) target bundleno = 2 (0x2), region = 98 }
 0x44c   :  { %2203 = vsyncpa [#allocation6], 1 }
 0x44d   :  { %2205 = vsyncpa [#allocation6 + $0x1], 1 }
 0x44e   :  { %2206 = vsyncpa [#allocation8], 1 }

</bundles_post_ra>
